<compile_context>
chip_gen: v7x
topology: tpu7x:2x2x1
jax: 0.10.0
libtpu: 0.0.40
codegen_flags: <defaults>
</compile_context>

<pallas_src>
import jax
import jax.numpy as jnp
from jax.experimental import pallas as pl
from jax.experimental.pallas import tpu as pltpu

IN_DIM = 2048
HID_DIM = 512
OUT_DIM = 4
OUT_PAD = 128       # lane-dense padded output width (real columns = first 4)
DEFAULT_TM = 256    # batch tile; fits v5e/v6e/v7x VMEM budgets with bf16 inputs


def fc_kernel(x_ref, w1_ref, b1_ref, w2_ref, b2_ref, o_ref, h_ref):
    # Layer 1: (tm, 2048)bf16 @ (2048, 512)bf16 -> (tm, 512)f32 on the MXU.
    h = jnp.dot(x_ref[...], w1_ref[...], preferred_element_type=jnp.float32)
    # Bias + ReLU on the VPU; keep the f32 intermediate in an explicit VMEM scratch.
    h_ref[...] = jnp.maximum(h + b1_ref[...], 0.0)
    # Layer 2: (tm, 512)bf16 @ (512, 128)bf16 -> (tm, 128)f32 (cols 4..127 are zero pad).
    out = jnp.dot(h_ref[...].astype(jnp.bfloat16), w2_ref[...],
                  preferred_element_type=jnp.float32)
    o_ref[...] = (out + b2_ref[...]).astype(o_ref.dtype)


def fc_forward(x, w1, b1, w2, b2, *, tm=DEFAULT_TM):
    """feat: [B, 2048] float32. Weights stored [in, out] (transposed vs. torch)."""
    B = x.shape[0]
    assert x.shape[1] == IN_DIM

    # Zero-pad the 4-wide output weights/bias to 128 lanes so the final store is
    # an unmasked, lane-dense vst (the biggest measured store-path lever).
    w2_p = jnp.zeros((HID_DIM, OUT_PAD), jnp.float32).at[:, :OUT_DIM].set(
        w2.astype(jnp.float32))
    b2_p = jnp.zeros((1, OUT_PAD), jnp.float32).at[:, :OUT_DIM].set(
        b2.reshape(1, OUT_DIM).astype(jnp.float32))

    # bf16 MXU inputs (f32 accumulation retained inside the kernel).
    x_bf = x.astype(jnp.bfloat16)
    w1_bf = w1.astype(jnp.bfloat16)
    w2_bf = w2_p.astype(jnp.bfloat16)
    b1_f = b1.reshape(1, HID_DIM).astype(jnp.float32)
    b2_f = b2_p

    # Batch tiling: 8-sublane align, cap the tile at the (aligned) batch, and pad
    # the batch up to a tile multiple so any B works (remainder handled by padding).
    b_align = ((B + 7) // 8) * 8
    tm_eff = min(tm, b_align)
    b_pad = ((b_align + tm_eff - 1) // tm_eff) * tm_eff
    if b_pad != B:
        x_bf = jnp.pad(x_bf, ((0, b_pad - B), (0, 0)))

    grid = (b_pad // tm_eff,)

    out_padded = pl.pallas_call(
        fc_kernel,
        out_shape=jax.ShapeDtypeStruct((b_pad, OUT_PAD), jnp.float32),
        grid_spec=pltpu.PrefetchScalarGridSpec(
            num_scalar_prefetch=0,
            grid=grid,
            in_specs=[
                pl.BlockSpec((tm_eff, IN_DIM), lambda i: (i, 0)),     # x tile
                # Weights/biases use constant block indices -> fetched once and
                # kept resident in VMEM across all grid steps (no re-DMA).
                pl.BlockSpec((IN_DIM, HID_DIM), lambda i: (0, 0)),    # W1
                pl.BlockSpec((1, HID_DIM), lambda i: (0, 0)),         # b1
                pl.BlockSpec((HID_DIM, OUT_PAD), lambda i: (0, 0)),   # W2 (padded)
                pl.BlockSpec((1, OUT_PAD), lambda i: (0, 0)),         # b2 (padded)
            ],
            out_specs=pl.BlockSpec((tm_eff, OUT_PAD), lambda i: (i, 0)),
            scratch_shapes=[pltpu.VMEM((tm_eff, HID_DIM), jnp.float32)],
        ),
        compiler_params=pltpu.CompilerParams(
            dimension_semantics=("parallel",),   # batch tiles shard across TCs (v7x)
            vmem_limit_bytes=32 * 1024 * 1024,   # headroom over v5e's 16 MiB default
        ),
    )(x_bf, w1_bf, b1_f, w2_bf, b2_f)

    # Strip batch padding and the lane padding of the 4-wide output.
    return out_padded[:B, :OUT_DIM].astype(x.dtype)


def init_params(key):
    """Deterministic init mimicking nn.Linear's uniform(-1/sqrt(fan_in), +) init."""
    k1, k2, k3, k4 = jax.random.split(key, 4)
    bound1 = 1.0 / jnp.sqrt(IN_DIM)
    bound2 = 1.0 / jnp.sqrt(HID_DIM)
    w1 = jax.random.uniform(k1, (IN_DIM, HID_DIM), jnp.float32, -bound1, bound1)
    b1 = jax.random.uniform(k2, (HID_DIM,), jnp.float32, -bound1, bound1)
    w2 = jax.random.uniform(k3, (HID_DIM, OUT_DIM), jnp.float32, -bound2, bound2)
    b2 = jax.random.uniform(k4, (OUT_DIM,), jnp.float32, -bound2, bound2)
    return w1, b1, w2, b2


if __name__ == "__main__":
    key = jax.random.PRNGKey(0)
    kx, kp = jax.random.split(key)

    B = 8  # small batch for the smoke test; feature dim fixed at 2048 by the module
    x = jax.random.normal(kx, (B, IN_DIM), jnp.float32)
    w1, b1, w2, b2 = init_params(kp)

    out = fc_forward(x, w1, b1, w2, b2)
    out = jax.block_until_ready(out)

    # Pure-JAX reference on the same bf16-input / f32-accumulate path as the kernel.
    h_ref = jnp.maximum(
        jnp.dot(x.astype(jnp.bfloat16), w1.astype(jnp.bfloat16),
                preferred_element_type=jnp.float32) + b1.reshape(1, -1), 0.0)
    ref = jnp.dot(h_ref.astype(jnp.bfloat16), w2.astype(jnp.bfloat16),
                  preferred_element_type=jnp.float32) + b2.reshape(1, -1)

    assert out.shape == (B, OUT_DIM)
    assert jnp.allclose(out, ref, atol=1e-2, rtol=1e-2), "mismatch vs reference"

    print("KERNEL_OK")
</pallas_src>

<mosaic_0001>
module attributes {stable_mosaic.version = 11 : i64} {
  func.func @fc_kernel(%arg0: i32, %arg1: memref<8x2048xbf16, #tpu.memory_space<vmem>>, %arg2: memref<2048x512xbf16, #tpu.memory_space<vmem>>, %arg3: memref<1x512xf32, #tpu.memory_space<vmem>>, %arg4: memref<512x128xbf16, #tpu.memory_space<vmem>>, %arg5: memref<1x128xf32, #tpu.memory_space<vmem>>, %arg6: memref<8x128xf32, #tpu.memory_space<vmem>>, %arg7: memref<8x512xf32, #tpu.memory_space<vmem>>) attributes {dimension_semantics = [#tpu.dimension_semantics<parallel>], iteration_bounds = array<i64: 1>, scalar_prefetch = 0 : i64, scratch_operands = 1 : i64, tpu.core_type = #tpu.core_type<tc>, window_params = [{transform_indices = @transform_0, window_bounds = array<i64: 8, 2048>}, {pipeline_mode = #tpu.pipeline_mode<synchronous>, transform_indices = @transform_1, window_bounds = array<i64: 2048, 512>}, {pipeline_mode = #tpu.pipeline_mode<synchronous>, transform_indices = @transform_2, window_bounds = array<i64: 1, 512>}, {pipeline_mode = #tpu.pipeline_mode<synchronous>, transform_indices = @transform_3, window_bounds = array<i64: 512, 128>}, {pipeline_mode = #tpu.pipeline_mode<synchronous>, transform_indices = @transform_4, window_bounds = array<i64: 1, 128>}, {transform_indices = @transform_5, window_bounds = array<i64: 8, 128>}]} {
    %c0 = arith.constant 0 : index
    %c0_0 = arith.constant 0 : index
    %0 = vector.load %arg1[%c0, %c0_0] : memref<8x2048xbf16, #tpu.memory_space<vmem>>, vector<8x2048xbf16>
    %c0_1 = arith.constant 0 : index
    %c0_2 = arith.constant 0 : index
    %1 = vector.load %arg2[%c0_1, %c0_2] : memref<2048x512xbf16, #tpu.memory_space<vmem>>, vector<2048x512xbf16>
    %cst = arith.constant dense<0.000000e+00> : vector<8x512xf32>
    %2 = tpu.matmul %0, %1, %cst {dimension_numbers = #tpu.dot_dimension_numbers<[1], [0], [0], [1], [0, 0, 1, 1], [], []>} : vector<8x2048xbf16>, vector<2048x512xbf16>, vector<8x512xf32> -> vector<8x512xf32>
    %c0_3 = arith.constant 0 : index
    %c0_4 = arith.constant 0 : index
    %3 = vector.load %arg3[%c0_3, %c0_4] : memref<1x512xf32, #tpu.memory_space<vmem>>, vector<1x512xf32>
    %4 = vector.broadcast %3 : vector<1x512xf32> to vector<8x512xf32>
    %5 = arith.addf %2, %4 : vector<8x512xf32>
    %cst_5 = arith.constant 0.000000e+00 : f32
    %6 = vector.broadcast %cst_5 : f32 to vector<8x512xf32>
    %7 = arith.maximumf %5, %6 : vector<8x512xf32>
    %c0_6 = arith.constant 0 : index
    %c0_7 = arith.constant 0 : index
    %8 = vector.load %arg7[%c0_6, %c0_7] : memref<8x512xf32, #tpu.memory_space<vmem>>, vector<8x512xf32>
    tpu.vector_store %arg7[%c0_6, %c0_7], %7 {strides = array<i32>} : memref<8x512xf32, #tpu.memory_space<vmem>>, vector<8x512xf32>,
    %c0_8 = arith.constant 0 : index
    %c0_9 = arith.constant 0 : index
    %9 = vector.load %arg7[%c0_8, %c0_9] : memref<8x512xf32, #tpu.memory_space<vmem>>, vector<8x512xf32>
    %10 = arith.truncf %9 : vector<8x512xf32> to vector<8x512xbf16>
    %c0_10 = arith.constant 0 : index
    %c0_11 = arith.constant 0 : index
    %11 = vector.load %arg4[%c0_10, %c0_11] : memref<512x128xbf16, #tpu.memory_space<vmem>>, vector<512x128xbf16>
    %cst_12 = arith.constant dense<0.000000e+00> : vector<8x128xf32>
    %12 = tpu.matmul %10, %11, %cst_12 {dimension_numbers = #tpu.dot_dimension_numbers<[1], [0], [0], [1], [0, 0, 1, 1], [], []>} : vector<8x512xbf16>, vector<512x128xbf16>, vector<8x128xf32> -> vector<8x128xf32>
    %c0_13 = arith.constant 0 : index
    %c0_14 = arith.constant 0 : index
    %13 = vector.load %arg5[%c0_13, %c0_14] : memref<1x128xf32, #tpu.memory_space<vmem>>, vector<1x128xf32>
    %14 = vector.broadcast %13 : vector<1x128xf32> to vector<8x128xf32>
    %15 = arith.addf %12, %14 : vector<8x128xf32>
    %c0_15 = arith.constant 0 : index
    %c0_16 = arith.constant 0 : index
    %16 = vector.load %arg6[%c0_15, %c0_16] : memref<8x128xf32, #tpu.memory_space<vmem>>, vector<8x128xf32>
    tpu.vector_store %arg6[%c0_15, %c0_16], %15 {strides = array<i32>} : memref<8x128xf32, #tpu.memory_space<vmem>>, vector<8x128xf32>,
    return
  }
  func.func @transform_0(%arg0: i32) -> (i32, i32) {
    %c0_i32 = arith.constant 0 : i32
    %c0_i32_0 = arith.constant 0 : i32
    return %arg0, %c0_i32 : i32, i32
  }
  func.func @transform_1(%arg0: i32) -> (i32, i32) {
    %c0_i32 = arith.constant 0 : i32
    %c0_i32_0 = arith.constant 0 : i32
    %c0_i32_1 = arith.constant 0 : i32
    return %c0_i32, %c0_i32_0 : i32, i32
  }
  func.func @transform_2(%arg0: i32) -> (i32, i32) {
    %c0_i32 = arith.constant 0 : i32
    %c0_i32_0 = arith.constant 0 : i32
    %c0_i32_1 = arith.constant 0 : i32
    return %c0_i32, %c0_i32_0 : i32, i32
  }
  func.func @transform_3(%arg0: i32) -> (i32, i32) {
    %c0_i32 = arith.constant 0 : i32
    %c0_i32_0 = arith.constant 0 : i32
    %c0_i32_1 = arith.constant 0 : i32
    return %c0_i32, %c0_i32_0 : i32, i32
  }
  func.func @transform_4(%arg0: i32) -> (i32, i32) {
    %c0_i32 = arith.constant 0 : i32
    %c0_i32_0 = arith.constant 0 : i32
    %c0_i32_1 = arith.constant 0 : i32
    return %c0_i32, %c0_i32_0 : i32, i32
  }
  func.func @transform_5(%arg0: i32) -> (i32, i32) {
    %c0_i32 = arith.constant 0 : i32
    %c0_i32_0 = arith.constant 0 : i32
    return %arg0, %c0_i32 : i32, i32
  }
}

</mosaic_0001>

<bundles_post_ra>
// kernel: tpu_custom_call.1
= control target key start
LH: loop header
LB: loop body
LE: loop exit
PB: predicated region body
PF: predicated region fallthrough
CT: control target
= control target key end

     0   :  { %10 = vsyncpa [#allocation4], 0  ;;  %s6060_s0 = inlined_call_operand.hbm [shape: bf16[8,2048], index: 0, kind: input, shape index: {}]   ;;  %s6061_s1 = inlined_call_operand.hbm [shape: bf16[2048,512], index: 1, kind: input, shape index: {}]   ;;  %s6062_s2 = inlined_call_operand.hbm [shape: f32[1,512], index: 2, kind: input, shape index: {}]   ;;  %s6063_s3 = inlined_call_operand.hbm [shape: bf16[512,128], index: 3, kind: input, shape index: {}]   ;;  %s6064_s4 = inlined_call_operand.hbm [shape: f32[1,128], index: 4, kind: input, shape index: {}]   ;;  %s6065_s5 = inlined_call_operand.hbm [shape: f32[8,128], index: 5, kind: output, shape index: {}]  }
   0x1   :  { %11 = vsyncpa [#allocation7], 0 }
   0x2   :  { %12 = vsyncpa [#allocation10], 0 }
   0x3   :  { %13 = vsyncpa [#allocation5], 0  ;;  %s5906_s18 = smov [#allocation6]   ;;  %s5766_s22 = scalar_lea.hbm %s6061_s1, 65536 }
   0x4   :  { %s29_s19 = sshll.u32 %s5906_s18, 4  ;;  %p5767_p0 = scmp.ne.s32.totalorder %s6061_s1, %s5766_s22  ;;  %s30_s19 = int_to_ptr.vmem [resolvable:$true] %s29_s19 }
   0x5   :  { %p5770_p1 = scmp.lt.u32.totalorder %s5766_s22, %s6061_s1 }
   0x7   :  { %p5772_p2 = pnand %p5770_p1, %p5767_p0 }
   0x9   :  { %5775 = shalt.err (!%p5772_p2)
}
   0xa   :  { %s5776_s27 = scalar_lea.vmem %s30_s19, 65536  ;;  %p5781_p4 = scmp.lt.s32.totalorder %s30_s19, %s30_s19 }
   0xb   :  { %p5777_p3 = scmp.ne.s32.totalorder %s30_s19, %s5776_s27  ;;  %p5782_p5 = scmp.lt.s32.totalorder %s5776_s27, %s5776_s27 }
   0xd   :  { %p5783_p6 = por %p5782_p5, %p5781_p4 }
   0xf   :  { %p5784_p7 = pnand %p5783_p6, %p5777_p3 }
  0x11   :  { %5787 = shalt.err (!%p5784_p7)
}
  0x12   :  { %s5907_s28 = smov 256   ;;  %s5908_s29 = smov 16  }
  0x13   :  { %35 = dma.hbm_to_vmem [thread:$0]  %s6061_s1, 65536, %s30_s19, [#allocation7], %s5907_s28, %s5907_s28, %s5908_s29  }
  0x14   :  { %s5909_s7 = smov [#allocation9]   ;;  %s5788_s11 = scalar_lea.hbm %s6063_s3, 4096 }
  0x15   :  { %s51_s8 = sshll.u32 %s5909_s7, 4  ;;  %p5789_p8 = scmp.ne.s32.totalorder %s6063_s3, %s5788_s11  ;;  %s52_s8 = int_to_ptr.vmem [resolvable:$true] %s51_s8 }
  0x16   :  { %p5792_p9 = scmp.lt.u32.totalorder %s5788_s11, %s6063_s3 }
  0x18   :  { %p5794_p10 = pnand %p5792_p9, %p5789_p8 }
  0x1a   :  { %5797 = shalt.err (!%p5794_p10)
}
  0x1b   :  { %s5798_s16 = scalar_lea.vmem %s52_s8, 4096  ;;  %p5803_p12 = scmp.lt.s32.totalorder %s52_s8, %s52_s8 }
  0x1c   :  { %p5799_p11 = scmp.ne.s32.totalorder %s52_s8, %s5798_s16  ;;  %p5804_p13 = scmp.lt.s32.totalorder %s5798_s16, %s5798_s16 }
  0x1e   :  { %p5805_p0 = por %p5804_p13, %p5803_p12 }
  0x20   :  { %p5806_p1 = pnand %p5805_p0, %p5799_p11 }
  0x22   :  { %5809 = shalt.err (!%p5806_p1)
}
  0x23   :  { %s5910_s1 = smov 64   ;;  %s5911_s17 = smov 4  }
  0x24   :  { %57 = dma.hbm_to_vmem [thread:$0]  %s6063_s3, 4096, %s52_s8, [#allocation10], %s5910_s1, %s5910_s1, %s5911_s17  }
  0x25   :  { %s5912_s20 = smov [#allocation3]   ;;  %s5913_s22 = smov [#allocation8]  }
  0x26   :  { %s20_s21 = sshll.u32 %s5912_s20, 4  ;;  %s42_s23 = sshll.u32 %s5913_s22, 4  ;;  %s21_s21 = int_to_ptr.vmem [resolvable:$true] %s20_s21  ;;  %s43_s23 = int_to_ptr.vmem [resolvable:$true] %s42_s23 }
  0x27   :  { %s5810_s26 = scalar_lea.hbm %s6060_s0, 1024 }
  0x28   :  { %p5811_p2 = scmp.ne.s32.totalorder %s6060_s0, %s5810_s26  ;;  %p5814_p3 = scmp.lt.u32.totalorder %s5810_s26, %s6060_s0 }
  0x2a   :  { %p5816_p4 = pnand %p5814_p3, %p5811_p2 }
  0x2c   :  { %5819 = shalt.err (!%p5816_p4)
}
  0x2d   :  { %s5820_s3 = scalar_lea.vmem %s21_s21, 1024  ;;  %p5825_p6 = scmp.lt.s32.totalorder %s21_s21, %s21_s21 }
  0x2e   :  { %p5821_p5 = scmp.ne.s32.totalorder %s21_s21, %s5820_s3  ;;  %p5826_p7 = scmp.lt.s32.totalorder %s5820_s3, %s5820_s3 }
  0x30   :  { %p5827_p8 = por %p5826_p7, %p5825_p6 }
  0x32   :  { %p5828_p9 = pnand %p5827_p8, %p5821_p5 }
  0x34   :  { %5831 = shalt.err (!%p5828_p9)
}
  0x35   :  { %23 = dma.hbm_to_vmem [thread:$0]  %s6060_s0, 1024, %s21_s21, [#allocation4]  }
  0x36   :  { %s5832_s10 = scalar_lea.hbm %s6062_s2, 64 }
  0x37   :  { %p5833_p10 = scmp.ne.s32.totalorder %s6062_s2, %s5832_s10  ;;  %p5836_p11 = scmp.lt.u32.totalorder %s5832_s10, %s6062_s2 }
  0x39   :  { %p5838_p12 = pnand %p5836_p11, %p5833_p10 }
  0x3b   :  { %5841 = shalt.err (!%p5838_p12)
}
  0x3c   :  { %s5842_s15 = scalar_lea.vmem %s43_s23, 64  ;;  %p5847_p0 = scmp.lt.s32.totalorder %s43_s23, %s43_s23 }
  0x3d   :  { %p5843_p13 = scmp.ne.s32.totalorder %s43_s23, %s5842_s15  ;;  %p5848_p1 = scmp.lt.s32.totalorder %s5842_s15, %s5842_s15 }
  0x3f   :  { %p5849_p2 = por %p5848_p1, %p5847_p0 }
  0x41   :  { %p5850_p3 = pnand %p5849_p2, %p5843_p13 }
  0x43   :  { %5853 = shalt.err (!%p5850_p3)
}
  0x44   :  { %45 = dma.hbm_to_vmem [thread:$0]  %s6062_s2, 64, %s43_s23, [#allocation7]  }
  0x45   :  { %s5914_s1 = smov [#allocation11]   ;;  %s5854_s20 = scalar_lea.hbm %s6064_s4, 16 }
  0x46   :  { %s64_s17 = sshll.u32 %s5914_s1, 4  ;;  %p5855_p4 = scmp.ne.s32.totalorder %s6064_s4, %s5854_s20  ;;  %s65_s17 = int_to_ptr.vmem [resolvable:$true] %s64_s17 }
  0x47   :  { %p5858_p5 = scmp.lt.u32.totalorder %s5854_s20, %s6064_s4 }
  0x49   :  { %p5860_p6 = pnand %p5858_p5, %p5855_p4 }
  0x4b   :  { %5863 = shalt.err (!%p5860_p6)
}
  0x4c   :  { %s5864_s26 = scalar_lea.vmem %s65_s17, 16  ;;  %s5868_s2 = scalar_lea.vmem %s65_s17, 32 }
  0x4d   :  { %p5865_p7 = scmp.ne.s32.totalorder %s65_s17, %s5864_s26  ;;  %p5869_p8 = scmp.lt.s32.totalorder %s65_s17, %s65_s17 }
  0x4e   :  { %p5870_p9 = scmp.lt.s32.totalorder %s5868_s2, %s5864_s26 }
  0x50   :  { %p5871_p10 = por %p5870_p9, %p5869_p8 }
  0x52   :  { %p5872_p11 = pnand %p5871_p10, %p5865_p7 }
  0x54   :  { %5875 = shalt.err (!%p5872_p11)
}
  0x55   :  { %67 = dma.hbm_to_vmem [thread:$0]  %s6064_s4, 16, %s65_s17, [#allocation10]  }
  0x56   :  { %5898 = dma.done.wait [#allocation4], 1024  }
  0x57   :  { %5899 = vsyncadd [#allocation4], 4294966272 }
  0x58   :  { %5900 = dma.done.wait [#allocation7], 65600  }
  0x59   :  { %5901 = vsyncadd [#allocation7], 4294901696 }
  0x5a   :  { %5902 = dma.done.wait [#allocation10], 4112  }
  0x5b   :  { %5903 = vsyncadd [#allocation10], 4294963184  ;;  %v4950_v0 = vld [vmem:[#allocation6 + $0x4] ss:$16 sps:$4 sm:$0xff]   ;;  %v4952_v1 = vld [vmem:[#allocation6 + $0xc] ss:$16 sps:$4 sm:$0xff]  }
  0x5c   :  { %3242 = vmatprep.subr.bf16.mxu0 %v4950_v0  ;;  %v4954_v2 = vld [vmem:[#allocation6] ss:$16 sps:$4 sm:$0xff]   ;;  %v4955_v3 = vld [vmem:[#allocation6 + $0x8] ss:$16 sps:$4 sm:$0xff]   ;;  %3570 = vmatprep.subr.bf16.mxu1 %v4952_v1  ;;  %v4956_v4 = vld [vmem:[#allocation6 + $0x24] ss:$16 sps:$4 sm:$0xff]  }
  0x5d   :  { %3243 = vmatpush1.bf16.msra.mxu0 %v4954_v2  ;;  %3571 = vmatpush1.bf16.msra.mxu1 %v4955_v3  ;;  %v4958_v5 = vld [vmem:[#allocation6 + $0x2c] ss:$16 sps:$4 sm:$0xff]   ;;  %v4960_v6 = vld [vmem:[#allocation6 + $0x20] ss:$16 sps:$4 sm:$0xff]   ;;  %v4961_v7 = vld [vmem:[#allocation6 + $0x28] ss:$16 sps:$4 sm:$0xff]  }
  0x5e   :  { %3244 = vmatprep.subr.bf16.mxu0 %v4956_v4  ;;  %3572 = vmatprep.subr.bf16.mxu1 %v4958_v5  ;;  %v4962_v8 = vld [vmem:[#allocation6 + $0x44] ss:$16 sps:$4 sm:$0xff]   ;;  %v4964_v9 = vld [vmem:[#allocation6 + $0x4c] ss:$16 sps:$4 sm:$0xff]   ;;  %v4966_v10 = vld [vmem:[#allocation6 + $0x40] ss:$16 sps:$4 sm:$0xff]  }
  0x5f   :  { %v4967_v11 = vld [vmem:[#allocation6 + $0x48] ss:$16 sps:$4 sm:$0xff]   ;;  %v4968_v12 = vld [vmem:[#allocation6 + $0x64] ss:$16 sps:$4 sm:$0xff]   ;;  %v4970_v13 = vld [vmem:[#allocation6 + $0x6c] ss:$16 sps:$4 sm:$0xff]  }
  0x60   :  { %v4972_v14 = vld [vmem:[#allocation6 + $0x60] ss:$16 sps:$4 sm:$0xff]   ;;  %v4973_v15 = vld [vmem:[#allocation6 + $0x68] ss:$16 sps:$4 sm:$0xff]   ;;  %v4974_v16 = vld [vmem:[#allocation6 + $0x84] ss:$16 sps:$4 sm:$0xff]  }
  0x61   :  { %3245 = vmatpush1.bf16.msra.mxu0 %v4960_v6  ;;  %3573 = vmatpush1.bf16.msra.mxu1 %v4961_v7  ;;  %v4976_v17 = vld [vmem:[#allocation6 + $0x8c] ss:$16 sps:$4 sm:$0xff]   ;;  %v4978_v18 = vld [vmem:[#allocation6 + $0x80] ss:$16 sps:$4 sm:$0xff]   ;;  %v4979_v19 = vld [vmem:[#allocation6 + $0x88] ss:$16 sps:$4 sm:$0xff]  }
  0x62   :  { %3246 = vmatprep.subr.bf16.mxu0 %v4962_v8  ;;  %3574 = vmatprep.subr.bf16.mxu1 %v4964_v9  ;;  %v4980_v20 = vld [vmem:[#allocation6 + $0xa4] ss:$16 sps:$4 sm:$0xff]   ;;  %v4982_v21 = vld [vmem:[#allocation6 + $0xac] ss:$16 sps:$4 sm:$0xff]   ;;  %v4984_v22 = vld [vmem:[#allocation6 + $0xa0] ss:$16 sps:$4 sm:$0xff]  }
  0x63   :  { %v4985_v23 = vld [vmem:[#allocation6 + $0xa8] ss:$16 sps:$4 sm:$0xff]   ;;  %v4986_v24 = vld [vmem:[#allocation6 + $0xc4] ss:$16 sps:$4 sm:$0xff]   ;;  %v4988_v25 = vld [vmem:[#allocation6 + $0xcc] ss:$16 sps:$4 sm:$0xff]  }
  0x64   :  { %v4990_v26 = vld [vmem:[#allocation6 + $0xc0] ss:$16 sps:$4 sm:$0xff]   ;;  %v4991_v27 = vld [vmem:[#allocation6 + $0xc8] ss:$16 sps:$4 sm:$0xff]   ;;  %v4992_v28 = vld [vmem:[#allocation6 + $0xe4] ss:$16 sps:$4 sm:$0xff]  }
  0x65   :  { %3247 = vmatpush1.bf16.msra.mxu0 %v4966_v10  ;;  %3575 = vmatpush1.bf16.msra.mxu1 %v4967_v11  ;;  %v4994_v29 = vld [vmem:[#allocation6 + $0xec] ss:$16 sps:$4 sm:$0xff]   ;;  %v4996_v30 = vld [vmem:[#allocation6 + $0xe0] ss:$16 sps:$4 sm:$0xff]   ;;  %v4997_v31 = vld [vmem:[#allocation6 + $0xe8] ss:$16 sps:$4 sm:$0xff]  }
  0x66   :  { %3248 = vmatprep.subr.bf16.mxu0 %v4968_v12  ;;  %3576 = vmatprep.subr.bf16.mxu1 %v4970_v13  ;;  %v4998_v32 = vld [vmem:[#allocation6 + $0x104] ss:$16 sps:$4 sm:$0xff]   ;;  %v5000_v33 = vld [vmem:[#allocation6 + $0x10c] ss:$16 sps:$4 sm:$0xff]   ;;  %v5002_v34 = vld [vmem:[#allocation6 + $0x100] ss:$16 sps:$4 sm:$0xff]  }
  0x67   :  { %v5003_v35 = vld [vmem:[#allocation6 + $0x108] ss:$16 sps:$4 sm:$0xff]   ;;  %v5004_v36 = vld [vmem:[#allocation6 + $0x124] ss:$16 sps:$4 sm:$0xff]   ;;  %v5006_v37 = vld [vmem:[#allocation6 + $0x12c] ss:$16 sps:$4 sm:$0xff]  }
  0x68   :  { %v5008_v38 = vld [vmem:[#allocation6 + $0x120] ss:$16 sps:$4 sm:$0xff]   ;;  %v5009_v39 = vld [vmem:[#allocation6 + $0x128] ss:$16 sps:$4 sm:$0xff]   ;;  %v5010_v40 = vld [vmem:[#allocation6 + $0x144] ss:$16 sps:$4 sm:$0xff]  }
  0x69   :  { %3249 = vmatpush1.bf16.msra.mxu0 %v4972_v14  ;;  %3577 = vmatpush1.bf16.msra.mxu1 %v4973_v15  ;;  %v5012_v41 = vld [vmem:[#allocation6 + $0x14c] ss:$16 sps:$4 sm:$0xff]   ;;  %v5014_v42 = vld [vmem:[#allocation6 + $0x140] ss:$16 sps:$4 sm:$0xff]   ;;  %v5015_v43 = vld [vmem:[#allocation6 + $0x148] ss:$16 sps:$4 sm:$0xff]  }
  0x6a   :  { %3250 = vmatprep.subr.bf16.mxu0 %v4974_v16  ;;  %3578 = vmatprep.subr.bf16.mxu1 %v4976_v17  ;;  %v5016_v44 = vld [vmem:[#allocation6 + $0x164] ss:$16 sps:$4 sm:$0xff]   ;;  %v5018_v45 = vld [vmem:[#allocation6 + $0x16c] ss:$16 sps:$4 sm:$0xff]   ;;  %v5020_v47 = vld [vmem:[#allocation6 + $0x160] ss:$16 sps:$4 sm:$0xff]  }
  0x6b   :  { %v84_v46 = vld [vmem:[#allocation3] sm:$0xff]  ;;  %v5021_v49 = vld [vmem:[#allocation6 + $0x168] ss:$16 sps:$4 sm:$0xff]   ;;  %v5024_v51 = vld [vmem:[#allocation6 + $0x18c] ss:$16 sps:$4 sm:$0xff]   ;;  %s5915_s4 = smov [#allocation12]  }
  0x6c   :  { %v4276_v48 = vcombine.high %v84_v46, %v84_v46  ;;  %v5022_v50 = vld [vmem:[#allocation6 + $0x184] ss:$16 sps:$4 sm:$0xff]   ;;  %v5026_v52 = vld [vmem:[#allocation6 + $0x180] ss:$16 sps:$4 sm:$0xff]   ;;  %v5027_v53 = vld [vmem:[#allocation6 + $0x188] ss:$16 sps:$4 sm:$0xff]   ;;  %v4275_v4 = vcombine.low %v84_v46, %v84_v46 }
  0x6d   :  { %3251 = vmatpush1.bf16.msra.mxu0 %v4978_v18  ;;  %3579 = vmatpush1.bf16.msra.mxu1 %v4979_v19  ;;  %v5028_v54 = vld [vmem:[#allocation6 + $0x1a4] ss:$16 sps:$4 sm:$0xff]   ;;  %v5030_v55 = vld [vmem:[#allocation6 + $0x1ac] ss:$16 sps:$4 sm:$0xff]   ;;  %v5032_v56 = vld [vmem:[#allocation6 + $0x1a0] ss:$16 sps:$4 sm:$0xff]  }
  0x6e   :  { %3252 = vmatprep.subr.bf16.mxu0 %v4980_v20  ;;  %3580 = vmatprep.subr.bf16.mxu1 %v4982_v21  ;;  %v5033_v57 = vld [vmem:[#allocation6 + $0x1a8] ss:$16 sps:$4 sm:$0xff]   ;;  %v5034_v58 = vld [vmem:[#allocation6 + $0x1c4] ss:$16 sps:$4 sm:$0xff]   ;;  %v5036_v59 = vld [vmem:[#allocation6 + $0x1cc] ss:$16 sps:$4 sm:$0xff]  }
  0x6f   :  { %3274 = vmatprep.mubr.bf16.mxu0 %v4276_v48  ;;  %3602 = vmatprep.mubr.bf16.mxu1 %v4276_v48  ;;  %v5038_v60 = vld [vmem:[#allocation6 + $0x1c0] ss:$16 sps:$4 sm:$0xff]   ;;  %v5039_v61 = vld [vmem:[#allocation6 + $0x1c8] ss:$16 sps:$4 sm:$0xff]   ;;  %v5040_v62 = vld [vmem:[#allocation6 + $0x1e4] ss:$16 sps:$4 sm:$0xff]  }
  0x70   :  { %v5042_v63 = vld [vmem:[#allocation6 + $0x1ec] ss:$16 sps:$4 sm:$0xff]   ;;  %v5044_v0 = vld [vmem:[#allocation6 + $0x1e0] ss:$16 sps:$4 sm:$0xff]   ;;  %v5045_v1 = vld [vmem:[#allocation6 + $0x1e8] ss:$16 sps:$4 sm:$0xff]  }
  0x71   :  { %3253 = vmatpush1.bf16.msra.mxu0 %v4984_v22  ;;  %3581 = vmatpush1.bf16.msra.mxu1 %v4985_v23  ;;  %v5050_v2 = vld [vmem:[#allocation6 + $0x204] ss:$16 sps:$4 sm:$0xff]   ;;  %v5053_v3 = vld [vmem:[#allocation6 + $0x20c] ss:$16 sps:$4 sm:$0xff]   ;;  %v5048_v5 = vld [vmem:[#allocation6 + $0x200] ss:$16 sps:$4 sm:$0xff]  }
  0x72   :  { %3254 = vmatprep.subr.bf16.mxu0 %v4986_v24  ;;  %3582 = vmatprep.subr.bf16.mxu1 %v4988_v25  ;;  %v5051_v6 = vld [vmem:[#allocation6 + $0x208] ss:$16 sps:$4 sm:$0xff]   ;;  %v5056_v7 = vld [vmem:[#allocation6 + $0x224] ss:$16 sps:$4 sm:$0xff]   ;;  %v5059_v8 = vld [vmem:[#allocation6 + $0x22c] ss:$16 sps:$4 sm:$0xff]  }
  0x73   :  { %v5054_v9 = vld [vmem:[#allocation6 + $0x220] ss:$16 sps:$4 sm:$0xff]   ;;  %v5057_v10 = vld [vmem:[#allocation6 + $0x228] ss:$16 sps:$4 sm:$0xff]   ;;  %v5062_v11 = vld [vmem:[#allocation6 + $0x244] ss:$16 sps:$4 sm:$0xff]  }
  0x74   :  { %v5065_v12 = vld [vmem:[#allocation6 + $0x24c] ss:$16 sps:$4 sm:$0xff]   ;;  %v5060_v13 = vld [vmem:[#allocation6 + $0x240] ss:$16 sps:$4 sm:$0xff]   ;;  %v5063_v14 = vld [vmem:[#allocation6 + $0x248] ss:$16 sps:$4 sm:$0xff]  }
  0x75   :  { %3255 = vmatpush1.bf16.msra.mxu0 %v4990_v26  ;;  %3583 = vmatpush1.bf16.msra.mxu1 %v4991_v27  ;;  %v5068_v15 = vld [vmem:[#allocation6 + $0x264] ss:$16 sps:$4 sm:$0xff]   ;;  %v5071_v16 = vld [vmem:[#allocation6 + $0x26c] ss:$16 sps:$4 sm:$0xff]   ;;  %v5066_v17 = vld [vmem:[#allocation6 + $0x260] ss:$16 sps:$4 sm:$0xff]  }
  0x76   :  { %3256 = vmatprep.subr.bf16.mxu0 %v4992_v28  ;;  %3584 = vmatprep.subr.bf16.mxu1 %v4994_v29  ;;  %v5069_v18 = vld [vmem:[#allocation6 + $0x268] ss:$16 sps:$4 sm:$0xff]   ;;  %v5074_v19 = vld [vmem:[#allocation6 + $0x284] ss:$16 sps:$4 sm:$0xff]   ;;  %v5077_v20 = vld [vmem:[#allocation6 + $0x28c] ss:$16 sps:$4 sm:$0xff]  }
  0x77   :  { %v5072_v21 = vld [vmem:[#allocation6 + $0x280] ss:$16 sps:$4 sm:$0xff]   ;;  %v5075_v22 = vld [vmem:[#allocation6 + $0x288] ss:$16 sps:$4 sm:$0xff]   ;;  %v5080_v23 = vld [vmem:[#allocation6 + $0x2a4] ss:$16 sps:$4 sm:$0xff]  }
  0x78   :  { %v5083_v24 = vld [vmem:[#allocation6 + $0x2ac] ss:$16 sps:$4 sm:$0xff]   ;;  %v5078_v25 = vld [vmem:[#allocation6 + $0x2a0] ss:$16 sps:$4 sm:$0xff]   ;;  %v5081_v26 = vld [vmem:[#allocation6 + $0x2a8] ss:$16 sps:$4 sm:$0xff]  }
  0x79   :  { %3257 = vmatpush1.bf16.msra.mxu0 %v4996_v30  ;;  %3585 = vmatpush1.bf16.msra.mxu1 %v4997_v31  ;;  %v5086_v27 = vld [vmem:[#allocation6 + $0x2c4] ss:$16 sps:$4 sm:$0xff]   ;;  %v5089_v28 = vld [vmem:[#allocation6 + $0x2cc] ss:$16 sps:$4 sm:$0xff]   ;;  %v5084_v31 = vld [vmem:[#allocation6 + $0x2c0] ss:$16 sps:$4 sm:$0xff]  }
  0x7a   :  { %3258 = vmatprep.subr.bf16.mxu0 %v4998_v32  ;;  %3586 = vmatprep.subr.bf16.mxu1 %v5000_v33  ;;  %v6006_v29 = vld [vmem:[#allocation3 + $0x8] sm:$0xff]  ;;  %v5092_v33 = vld [vmem:[#allocation6 + $0x2e4] ss:$16 sps:$4 sm:$0xff]   ;;  %s4264_s28 = sshll.u32 %s5915_s4, 4  ;;  %s4265_s28 = int_to_ptr.vmem [resolvable:$true] %s4264_s28 }
  0x7b   :  { %v4278_v30 = vcombine.high %v6006_v29, %v6006_v29  ;;  %v5087_v32 = vld [vmem:[#allocation6 + $0x2c8] ss:$16 sps:$4 sm:$0xff]   ;;  %v5113_v46 = vld [vmem:[#allocation6 + $0x34c] ss:$16 sps:$4 sm:$0xff]   ;;  %s5876_s29 = scalar_lea.vmem %s4265_s28, 128  ;;  %p5881_p13 = scmp.lt.s32.totalorder %s4265_s28, %s4265_s28 }
  0x7c   :  { %v5111_v48 = vld [vmem:[#allocation6 + $0x348] ss:$16 sps:$4 sm:$0xff]   ;;  %p5877_p12 = scmp.ne.s32.totalorder %s4265_s28, %s5876_s29  ;;  %p5882_p0 = scmp.lt.s32.totalorder %s5876_s29, %s5876_s29 }
  0x7d   :  { %3259 = vmatpush1.bf16.msra.mxu0 %v5002_v34  ;;  %3587 = vmatpush1.bf16.msra.mxu1 %v5003_v35  ;;  %v5095_v34 = vld [vmem:[#allocation6 + $0x2ec] ss:$16 sps:$4 sm:$0xff]   ;;  %v5090_v35 = vld [vmem:[#allocation6 + $0x2e0] ss:$16 sps:$4 sm:$0xff]  }
  0x7e   :  { %3260 = vmatprep.subr.bf16.mxu0 %v5004_v36  ;;  %3588 = vmatprep.subr.bf16.mxu1 %v5006_v37  ;;  %v5093_v36 = vld [vmem:[#allocation6 + $0x2e8] ss:$16 sps:$4 sm:$0xff]   ;;  %v5098_v37 = vld [vmem:[#allocation6 + $0x304] ss:$16 sps:$4 sm:$0xff]   ;;  %p5883_p1 = por %p5882_p0, %p5881_p13 }
  0x80   :  { %p5884_p2 = pnand %p5883_p1, %p5877_p12 }
  0x81   :  { %3261 = vmatpush1.bf16.msra.mxu0 %v5008_v38  ;;  %3589 = vmatpush1.bf16.msra.mxu1 %v5009_v39  ;;  %v5101_v38 = vld [vmem:[#allocation6 + $0x30c] ss:$16 sps:$4 sm:$0xff]   ;;  %v5096_v39 = vld [vmem:[#allocation6 + $0x300] ss:$16 sps:$4 sm:$0xff]  }
  0x82   :  { %3262 = vmatprep.subr.bf16.mxu0 %v5010_v40  ;;  %3590 = vmatprep.subr.bf16.mxu1 %v5012_v41  ;;  %v5099_v40 = vld [vmem:[#allocation6 + $0x308] ss:$16 sps:$4 sm:$0xff]   ;;  %v5104_v41 = vld [vmem:[#allocation6 + $0x324] ss:$16 sps:$4 sm:$0xff]  }
  0x85   :  { %3263 = vmatpush1.bf16.msra.mxu0 %v5014_v42  ;;  %3591 = vmatpush1.bf16.msra.mxu1 %v5015_v43  ;;  %v5107_v42 = vld [vmem:[#allocation6 + $0x32c] ss:$16 sps:$4 sm:$0xff]   ;;  %v5102_v43 = vld [vmem:[#allocation6 + $0x320] ss:$16 sps:$4 sm:$0xff]  }
  0x86   :  { %3264 = vmatprep.subr.bf16.mxu0 %v5016_v44  ;;  %3592 = vmatprep.subr.bf16.mxu1 %v5018_v45  ;;  %v5105_v44 = vld [vmem:[#allocation6 + $0x328] ss:$16 sps:$4 sm:$0xff]   ;;  %v5110_v45 = vld [vmem:[#allocation6 + $0x344] ss:$16 sps:$4 sm:$0xff]  }
  0x89   :  { %3265 = vmatpush1.bf16.msra.mxu0 %v5020_v47  ;;  %3593 = vmatpush1.bf16.msra.mxu1 %v5021_v49  ;;  %v5108_v47 = vld [vmem:[#allocation6 + $0x340] ss:$16 sps:$4 sm:$0xff]   ;;  %v5116_v49 = vld [vmem:[#allocation6 + $0x364] ss:$16 sps:$4 sm:$0xff]  }
  0x8a   :  { %3266 = vmatprep.subr.bf16.mxu0 %v5022_v50  ;;  %3594 = vmatprep.subr.bf16.mxu1 %v5024_v51  ;;  %v5119_v50 = vld [vmem:[#allocation6 + $0x36c] ss:$16 sps:$4 sm:$0xff]   ;;  %v5114_v51 = vld [vmem:[#allocation6 + $0x360] ss:$16 sps:$4 sm:$0xff]  }
  0x8d   :  { %3267 = vmatpush1.bf16.msra.mxu0 %v5026_v52  ;;  %3595 = vmatpush1.bf16.msra.mxu1 %v5027_v53  ;;  %v5117_v52 = vld [vmem:[#allocation6 + $0x368] ss:$16 sps:$4 sm:$0xff]   ;;  %v5122_v53 = vld [vmem:[#allocation6 + $0x384] ss:$16 sps:$4 sm:$0xff]  }
  0x8e   :  { %3268 = vmatprep.subr.bf16.mxu0 %v5028_v54  ;;  %3596 = vmatprep.subr.bf16.mxu1 %v5030_v55  ;;  %v5125_v54 = vld [vmem:[#allocation6 + $0x38c] ss:$16 sps:$4 sm:$0xff]   ;;  %v5120_v55 = vld [vmem:[#allocation6 + $0x380] ss:$16 sps:$4 sm:$0xff]  }
  0x91   :  { %3269 = vmatpush1.bf16.msra.mxu0 %v5032_v56  ;;  %3597 = vmatpush1.bf16.msra.mxu1 %v5033_v57  ;;  %v5123_v56 = vld [vmem:[#allocation6 + $0x388] ss:$16 sps:$4 sm:$0xff]   ;;  %v5128_v57 = vld [vmem:[#allocation6 + $0x3a4] ss:$16 sps:$4 sm:$0xff]  }
  0x92   :  { %3270 = vmatprep.subr.bf16.mxu0 %v5034_v58  ;;  %3598 = vmatprep.subr.bf16.mxu1 %v5036_v59  ;;  %v5131_v58 = vld [vmem:[#allocation6 + $0x3ac] ss:$16 sps:$4 sm:$0xff]   ;;  %v5126_v59 = vld [vmem:[#allocation6 + $0x3a0] ss:$16 sps:$4 sm:$0xff]  }
  0x95   :  { %3271 = vmatpush1.bf16.msra.mxu0 %v5038_v60  ;;  %3599 = vmatpush1.bf16.msra.mxu1 %v5039_v61  ;;  %v5129_v60 = vld [vmem:[#allocation6 + $0x3a8] ss:$16 sps:$4 sm:$0xff]   ;;  %v5134_v61 = vld [vmem:[#allocation6 + $0x3c4] ss:$16 sps:$4 sm:$0xff]  }
  0x96   :  { %3272 = vmatprep.subr.bf16.mxu0 %v5040_v62  ;;  %3600 = vmatprep.subr.bf16.mxu1 %v5042_v63  ;;  %v5137_v62 = vld [vmem:[#allocation6 + $0x3cc] ss:$16 sps:$4 sm:$0xff]   ;;  %v5132_v63 = vld [vmem:[#allocation6 + $0x3c0] ss:$16 sps:$4 sm:$0xff]  }
  0x99   :  { %3273 = vmatpush1.bf16.msra.mxu0 %v5044_v0  ;;  %3601 = vmatpush1.bf16.msra.mxu1 %v5045_v1  ;;  %v5135_v0 = vld [vmem:[#allocation6 + $0x3c8] ss:$16 sps:$4 sm:$0xff]   ;;  %v5140_v1 = vld [vmem:[#allocation6 + $0x3e4] ss:$16 sps:$4 sm:$0xff]  }
  0x9a   :  { %3283 = vmatprep.subr.bf16.mxu0 %v5050_v2  ;;  %3611 = vmatprep.subr.bf16.mxu1 %v5053_v3  ;;  %v5143_v2 = vld [vmem:[#allocation6 + $0x3ec] ss:$16 sps:$4 sm:$0xff]   ;;  %v5138_v3 = vld [vmem:[#allocation6 + $0x3e0] ss:$16 sps:$4 sm:$0xff]  }
  0x9c   :  { %3275 = vmatmul.mubr.bf16.vlgmr.msra.gmra.mrb[0].mxu0 %v4275_v4  ;;  %3603 = vmatmul.mubr.bf16.vlgmr.msra.gmra.mrb[0].mxu1 %v4275_v4  ;;  %v5141_v4 = vld [vmem:[#allocation6 + $0x3e8] ss:$16 sps:$4 sm:$0xff]  }
  0x9d   :  { %3284 = vmatpush1.bf16.msra.mxu0 %v5048_v5  ;;  %3612 = vmatpush1.bf16.msra.mxu1 %v5051_v6  ;;  %v5148_v5 = vld [vmem:[#allocation6 + $0x404] ss:$16 sps:$4 sm:$0xff]   ;;  %v5151_v6 = vld [vmem:[#allocation6 + $0x40c] ss:$16 sps:$4 sm:$0xff]  }
  0x9e   :  { %3285 = vmatprep.subr.bf16.mxu0 %v5056_v7  ;;  %3613 = vmatprep.subr.bf16.mxu1 %v5059_v8  ;;  %v4277_v7 = vcombine.low %v6006_v29, %v6006_v29  ;;  %v5146_v8 = vld [vmem:[#allocation6 + $0x400] ss:$16 sps:$4 sm:$0xff]   ;;  %v5181_v29 = vld [vmem:[#allocation6 + $0x4ac] ss:$16 sps:$4 sm:$0xff]  }
  0x9f   :  { %3315 = vmatprep.mubr.bf16.mxu0 %v4278_v30  ;;  %3643 = vmatprep.mubr.bf16.mxu1 %v4278_v30  ;;  %v5176_v30 = vld [vmem:[#allocation6 + $0x4a0] ss:$16 sps:$4 sm:$0xff]  }
  0xa1   :  { %3286 = vmatpush1.bf16.msra.mxu0 %v5054_v9  ;;  %3614 = vmatpush1.bf16.msra.mxu1 %v5057_v10  ;;  %v5149_v9 = vld [vmem:[#allocation6 + $0x408] ss:$16 sps:$4 sm:$0xff]   ;;  %v5154_v10 = vld [vmem:[#allocation6 + $0x424] ss:$16 sps:$4 sm:$0xff]  }
  0xa2   :  { %3287 = vmatprep.subr.bf16.mxu0 %v5062_v11  ;;  %3615 = vmatprep.subr.bf16.mxu1 %v5065_v12  ;;  %v6012_v11 = vld [vmem:[#allocation3 + $0x10] sm:$0xff]  ;;  %v5157_v12 = vld [vmem:[#allocation6 + $0x42c] ss:$16 sps:$4 sm:$0xff]  }
  0xa5   :  { %3288 = vmatpush1.bf16.msra.mxu0 %v5060_v13  ;;  %3616 = vmatpush1.bf16.msra.mxu1 %v5063_v14  ;;  %v4280_v13 = vcombine.high %v6012_v11, %v6012_v11  ;;  %v5152_v14 = vld [vmem:[#allocation6 + $0x420] ss:$16 sps:$4 sm:$0xff]  }
  0xa6   :  { %3289 = vmatprep.subr.bf16.mxu0 %v5068_v15  ;;  %3617 = vmatprep.subr.bf16.mxu1 %v5071_v16  ;;  %v5155_v15 = vld [vmem:[#allocation6 + $0x428] ss:$16 sps:$4 sm:$0xff]   ;;  %v5160_v16 = vld [vmem:[#allocation6 + $0x444] ss:$16 sps:$4 sm:$0xff]  }
  0xa9   :  { %3290 = vmatpush1.bf16.msra.mxu0 %v5066_v17  ;;  %3618 = vmatpush1.bf16.msra.mxu1 %v5069_v18  ;;  %v5163_v17 = vld [vmem:[#allocation6 + $0x44c] ss:$16 sps:$4 sm:$0xff]   ;;  %v5158_v18 = vld [vmem:[#allocation6 + $0x440] ss:$16 sps:$4 sm:$0xff]  }
  0xaa   :  { %3291 = vmatprep.subr.bf16.mxu0 %v5074_v19  ;;  %3619 = vmatprep.subr.bf16.mxu1 %v5077_v20  ;;  %v5161_v19 = vld [vmem:[#allocation6 + $0x448] ss:$16 sps:$4 sm:$0xff]   ;;  %v5166_v20 = vld [vmem:[#allocation6 + $0x464] ss:$16 sps:$4 sm:$0xff]  }
  0xad   :  { %3292 = vmatpush1.bf16.msra.mxu0 %v5072_v21  ;;  %3620 = vmatpush1.bf16.msra.mxu1 %v5075_v22  ;;  %v5169_v21 = vld [vmem:[#allocation6 + $0x46c] ss:$16 sps:$4 sm:$0xff]   ;;  %v5164_v22 = vld [vmem:[#allocation6 + $0x460] ss:$16 sps:$4 sm:$0xff]  }
  0xae   :  { %3293 = vmatprep.subr.bf16.mxu0 %v5080_v23  ;;  %3621 = vmatprep.subr.bf16.mxu1 %v5083_v24  ;;  %v5167_v23 = vld [vmem:[#allocation6 + $0x468] ss:$16 sps:$4 sm:$0xff]   ;;  %v5172_v24 = vld [vmem:[#allocation6 + $0x484] ss:$16 sps:$4 sm:$0xff]  }
  0xb1   :  { %3294 = vmatpush1.bf16.msra.mxu0 %v5078_v25  ;;  %3622 = vmatpush1.bf16.msra.mxu1 %v5081_v26  ;;  %v5175_v25 = vld [vmem:[#allocation6 + $0x48c] ss:$16 sps:$4 sm:$0xff]   ;;  %v5170_v26 = vld [vmem:[#allocation6 + $0x480] ss:$16 sps:$4 sm:$0xff]  }
  0xb2   :  { %3295 = vmatprep.subr.bf16.mxu0 %v5086_v27  ;;  %3623 = vmatprep.subr.bf16.mxu1 %v5089_v28  ;;  %v5173_v27 = vld [vmem:[#allocation6 + $0x488] ss:$16 sps:$4 sm:$0xff]   ;;  %v5178_v28 = vld [vmem:[#allocation6 + $0x4a4] ss:$16 sps:$4 sm:$0xff]  }
  0xb5   :  { %3296 = vmatpush1.bf16.msra.mxu0 %v5084_v31  ;;  %3624 = vmatpush1.bf16.msra.mxu1 %v5087_v32  ;;  %v5179_v31 = vld [vmem:[#allocation6 + $0x4a8] ss:$16 sps:$4 sm:$0xff]   ;;  %v5184_v32 = vld [vmem:[#allocation6 + $0x4c4] ss:$16 sps:$4 sm:$0xff]  }
  0xb6   :  { %3297 = vmatprep.subr.bf16.mxu0 %v5092_v33  ;;  %3625 = vmatprep.subr.bf16.mxu1 %v5095_v34  ;;  %v5187_v33 = vld [vmem:[#allocation6 + $0x4cc] ss:$16 sps:$4 sm:$0xff]   ;;  %v5182_v34 = vld [vmem:[#allocation6 + $0x4c0] ss:$16 sps:$4 sm:$0xff]  }
  0xb9   :  { %3298 = vmatpush1.bf16.msra.mxu0 %v5090_v35  ;;  %3626 = vmatpush1.bf16.msra.mxu1 %v5093_v36  ;;  %v5185_v35 = vld [vmem:[#allocation6 + $0x4c8] ss:$16 sps:$4 sm:$0xff]   ;;  %v5190_v36 = vld [vmem:[#allocation6 + $0x4e4] ss:$16 sps:$4 sm:$0xff]  }
  0xba   :  { %3299 = vmatprep.subr.bf16.mxu0 %v5098_v37  ;;  %3627 = vmatprep.subr.bf16.mxu1 %v5101_v38  ;;  %v5193_v37 = vld [vmem:[#allocation6 + $0x4ec] ss:$16 sps:$4 sm:$0xff]   ;;  %v5188_v38 = vld [vmem:[#allocation6 + $0x4e0] ss:$16 sps:$4 sm:$0xff]  }
  0xbd   :  { %3300 = vmatpush1.bf16.msra.mxu0 %v5096_v39  ;;  %3628 = vmatpush1.bf16.msra.mxu1 %v5099_v40  ;;  %v5191_v39 = vld [vmem:[#allocation6 + $0x4e8] ss:$16 sps:$4 sm:$0xff]   ;;  %v5196_v40 = vld [vmem:[#allocation6 + $0x504] ss:$16 sps:$4 sm:$0xff]  }
  0xbe   :  { %3301 = vmatprep.subr.bf16.mxu0 %v5104_v41  ;;  %3629 = vmatprep.subr.bf16.mxu1 %v5107_v42  ;;  %v5199_v41 = vld [vmem:[#allocation6 + $0x50c] ss:$16 sps:$4 sm:$0xff]   ;;  %v5194_v42 = vld [vmem:[#allocation6 + $0x500] ss:$16 sps:$4 sm:$0xff]  }
  0xc1   :  { %3302 = vmatpush1.bf16.msra.mxu0 %v5102_v43  ;;  %3630 = vmatpush1.bf16.msra.mxu1 %v5105_v44  ;;  %v5197_v43 = vld [vmem:[#allocation6 + $0x508] ss:$16 sps:$4 sm:$0xff]   ;;  %v5202_v44 = vld [vmem:[#allocation6 + $0x524] ss:$16 sps:$4 sm:$0xff]  }
  0xc2   :  { %3303 = vmatprep.subr.bf16.mxu0 %v5110_v45  ;;  %3631 = vmatprep.subr.bf16.mxu1 %v5113_v46  ;;  %v5205_v45 = vld [vmem:[#allocation6 + $0x52c] ss:$16 sps:$4 sm:$0xff]   ;;  %v5200_v46 = vld [vmem:[#allocation6 + $0x520] ss:$16 sps:$4 sm:$0xff]  }
  0xc5   :  { %3304 = vmatpush1.bf16.msra.mxu0 %v5108_v47  ;;  %3632 = vmatpush1.bf16.msra.mxu1 %v5111_v48  ;;  %v5203_v47 = vld [vmem:[#allocation6 + $0x528] ss:$16 sps:$4 sm:$0xff]   ;;  %v5208_v48 = vld [vmem:[#allocation6 + $0x544] ss:$16 sps:$4 sm:$0xff]  }
  0xc6   :  { %3305 = vmatprep.subr.bf16.mxu0 %v5116_v49  ;;  %3633 = vmatprep.subr.bf16.mxu1 %v5119_v50  ;;  %v5211_v49 = vld [vmem:[#allocation6 + $0x54c] ss:$16 sps:$4 sm:$0xff]   ;;  %v5206_v50 = vld [vmem:[#allocation6 + $0x540] ss:$16 sps:$4 sm:$0xff]  }
  0xc9   :  { %3306 = vmatpush1.bf16.msra.mxu0 %v5114_v51  ;;  %3634 = vmatpush1.bf16.msra.mxu1 %v5117_v52  ;;  %v5209_v51 = vld [vmem:[#allocation6 + $0x548] ss:$16 sps:$4 sm:$0xff]   ;;  %v5214_v52 = vld [vmem:[#allocation6 + $0x564] ss:$16 sps:$4 sm:$0xff]  }
  0xca   :  { %3307 = vmatprep.subr.bf16.mxu0 %v5122_v53  ;;  %3635 = vmatprep.subr.bf16.mxu1 %v5125_v54  ;;  %v5217_v53 = vld [vmem:[#allocation6 + $0x56c] ss:$16 sps:$4 sm:$0xff]   ;;  %v5212_v54 = vld [vmem:[#allocation6 + $0x560] ss:$16 sps:$4 sm:$0xff]  }
  0xcd   :  { %3308 = vmatpush1.bf16.msra.mxu0 %v5120_v55  ;;  %3636 = vmatpush1.bf16.msra.mxu1 %v5123_v56  ;;  %v5215_v55 = vld [vmem:[#allocation6 + $0x568] ss:$16 sps:$4 sm:$0xff]   ;;  %v5220_v56 = vld [vmem:[#allocation6 + $0x584] ss:$16 sps:$4 sm:$0xff]  }
  0xce   :  { %3309 = vmatprep.subr.bf16.mxu0 %v5128_v57  ;;  %3637 = vmatprep.subr.bf16.mxu1 %v5131_v58  ;;  %v5223_v57 = vld [vmem:[#allocation6 + $0x58c] ss:$16 sps:$4 sm:$0xff]   ;;  %v5218_v58 = vld [vmem:[#allocation6 + $0x580] ss:$16 sps:$4 sm:$0xff]  }
  0xd1   :  { %3310 = vmatpush1.bf16.msra.mxu0 %v5126_v59  ;;  %3638 = vmatpush1.bf16.msra.mxu1 %v5129_v60  ;;  %v5221_v59 = vld [vmem:[#allocation6 + $0x588] ss:$16 sps:$4 sm:$0xff]   ;;  %v5226_v60 = vld [vmem:[#allocation6 + $0x5a4] ss:$16 sps:$4 sm:$0xff]  }
  0xd2   :  { %3311 = vmatprep.subr.bf16.mxu0 %v5134_v61  ;;  %3639 = vmatprep.subr.bf16.mxu1 %v5137_v62  ;;  %v5229_v61 = vld [vmem:[#allocation6 + $0x5ac] ss:$16 sps:$4 sm:$0xff]   ;;  %v5224_v62 = vld [vmem:[#allocation6 + $0x5a0] ss:$16 sps:$4 sm:$0xff]  }
  0xd5   :  { %3312 = vmatpush1.bf16.msra.mxu0 %v5132_v63  ;;  %3640 = vmatpush1.bf16.msra.mxu1 %v5135_v0  ;;  %v5227_v63 = vld [vmem:[#allocation6 + $0x5a8] ss:$16 sps:$4 sm:$0xff]   ;;  %v5232_v0 = vld [vmem:[#allocation6 + $0x5c4] ss:$16 sps:$4 sm:$0xff]  }
  0xd6   :  { %3313 = vmatprep.subr.bf16.mxu0 %v5140_v1  ;;  %3641 = vmatprep.subr.bf16.mxu1 %v5143_v2  ;;  %v5235_v1 = vld [vmem:[#allocation6 + $0x5cc] ss:$16 sps:$4 sm:$0xff]   ;;  %v5230_v2 = vld [vmem:[#allocation6 + $0x5c0] ss:$16 sps:$4 sm:$0xff]  }
  0xd9   :  { %3314 = vmatpush1.bf16.msra.mxu0 %v5138_v3  ;;  %3642 = vmatpush1.bf16.msra.mxu1 %v5141_v4  ;;  %v5233_v3 = vld [vmem:[#allocation6 + $0x5c8] ss:$16 sps:$4 sm:$0xff]   ;;  %v5238_v4 = vld [vmem:[#allocation6 + $0x5e4] ss:$16 sps:$4 sm:$0xff]  }
  0xda   :  { %3324 = vmatprep.subr.bf16.mxu0 %v5148_v5  ;;  %3652 = vmatprep.subr.bf16.mxu1 %v5151_v6  ;;  %v5241_v5 = vld [vmem:[#allocation6 + $0x5ec] ss:$16 sps:$4 sm:$0xff]   ;;  %v5236_v6 = vld [vmem:[#allocation6 + $0x5e0] ss:$16 sps:$4 sm:$0xff]  }
  0xdc   :  { %3316 = vmatmul.mubr.bf16.vlgmr.msra.gmra.mrb[0].mxu0 %v4277_v7  ;;  %3644 = vmatmul.mubr.bf16.vlgmr.msra.gmra.mrb[0].mxu1 %v4277_v7  ;;  %v5239_v7 = vld [vmem:[#allocation6 + $0x5e8] ss:$16 sps:$4 sm:$0xff]  }
  0xdd   :  { %3325 = vmatpush1.bf16.msra.mxu0 %v5146_v8  ;;  %3653 = vmatpush1.bf16.msra.mxu1 %v5149_v9  ;;  %v5246_v8 = vld [vmem:[#allocation6 + $0x604] ss:$16 sps:$4 sm:$0xff]   ;;  %v5249_v9 = vld [vmem:[#allocation6 + $0x60c] ss:$16 sps:$4 sm:$0xff]  }
  0xde   :  { %3326 = vmatprep.subr.bf16.mxu0 %v5154_v10  ;;  %3654 = vmatprep.subr.bf16.mxu1 %v5157_v12  ;;  %v5244_v10 = vld [vmem:[#allocation6 + $0x600] ss:$16 sps:$4 sm:$0xff]   ;;  %v4279_v12 = vcombine.low %v6012_v11, %v6012_v11  ;;  %v5261_v11 = vld [vmem:[#allocation6 + $0x64c] ss:$16 sps:$4 sm:$0xff]  }
  0xdf   :  { %3356 = vmatprep.mubr.bf16.mxu0 %v4280_v13  ;;  %3684 = vmatprep.mubr.bf16.mxu1 %v4280_v13  ;;  %v5247_v13 = vld [vmem:[#allocation6 + $0x608] ss:$16 sps:$4 sm:$0xff]  }
  0xe1   :  { %3327 = vmatpush1.bf16.msra.mxu0 %v5152_v14  ;;  %3655 = vmatpush1.bf16.msra.mxu1 %v5155_v15  ;;  %v6018_v14 = vld [vmem:[#allocation3 + $0x18] sm:$0xff]  ;;  %v5252_v15 = vld [vmem:[#allocation6 + $0x624] ss:$16 sps:$4 sm:$0xff]  }
  0xe2   :  { %3328 = vmatprep.subr.bf16.mxu0 %v5160_v16  ;;  %3656 = vmatprep.subr.bf16.mxu1 %v5163_v17  ;;  %v5255_v16 = vld [vmem:[#allocation6 + $0x62c] ss:$16 sps:$4 sm:$0xff]   ;;  %v4282_v17 = vcombine.high %v6018_v14, %v6018_v14 }
  0xe5   :  { %3329 = vmatpush1.bf16.msra.mxu0 %v5158_v18  ;;  %3657 = vmatpush1.bf16.msra.mxu1 %v5161_v19  ;;  %v5250_v18 = vld [vmem:[#allocation6 + $0x620] ss:$16 sps:$4 sm:$0xff]   ;;  %v5253_v19 = vld [vmem:[#allocation6 + $0x628] ss:$16 sps:$4 sm:$0xff]  }
  0xe6   :  { %3330 = vmatprep.subr.bf16.mxu0 %v5166_v20  ;;  %3658 = vmatprep.subr.bf16.mxu1 %v5169_v21  ;;  %v5258_v20 = vld [vmem:[#allocation6 + $0x644] ss:$16 sps:$4 sm:$0xff]   ;;  %v5256_v21 = vld [vmem:[#allocation6 + $0x640] ss:$16 sps:$4 sm:$0xff]  }
  0xe9   :  { %3331 = vmatpush1.bf16.msra.mxu0 %v5164_v22  ;;  %3659 = vmatpush1.bf16.msra.mxu1 %v5167_v23  ;;  %v5259_v22 = vld [vmem:[#allocation6 + $0x648] ss:$16 sps:$4 sm:$0xff]   ;;  %v5264_v23 = vld [vmem:[#allocation6 + $0x664] ss:$16 sps:$4 sm:$0xff]  }
  0xea   :  { %3332 = vmatprep.subr.bf16.mxu0 %v5172_v24  ;;  %3660 = vmatprep.subr.bf16.mxu1 %v5175_v25  ;;  %v5267_v24 = vld [vmem:[#allocation6 + $0x66c] ss:$16 sps:$4 sm:$0xff]   ;;  %v5262_v25 = vld [vmem:[#allocation6 + $0x660] ss:$16 sps:$4 sm:$0xff]  }
  0xed   :  { %3333 = vmatpush1.bf16.msra.mxu0 %v5170_v26  ;;  %3661 = vmatpush1.bf16.msra.mxu1 %v5173_v27  ;;  %v5265_v26 = vld [vmem:[#allocation6 + $0x668] ss:$16 sps:$4 sm:$0xff]   ;;  %v5270_v27 = vld [vmem:[#allocation6 + $0x684] ss:$16 sps:$4 sm:$0xff]  }
  0xee   :  { %3334 = vmatprep.subr.bf16.mxu0 %v5178_v28  ;;  %3662 = vmatprep.subr.bf16.mxu1 %v5181_v29  ;;  %v5273_v28 = vld [vmem:[#allocation6 + $0x68c] ss:$16 sps:$4 sm:$0xff]   ;;  %v5268_v29 = vld [vmem:[#allocation6 + $0x680] ss:$16 sps:$4 sm:$0xff]  }
  0xf1   :  { %3335 = vmatpush1.bf16.msra.mxu0 %v5176_v30  ;;  %3663 = vmatpush1.bf16.msra.mxu1 %v5179_v31  ;;  %v5271_v30 = vld [vmem:[#allocation6 + $0x688] ss:$16 sps:$4 sm:$0xff]   ;;  %v5276_v31 = vld [vmem:[#allocation6 + $0x6a4] ss:$16 sps:$4 sm:$0xff]  }
  0xf2   :  { %3336 = vmatprep.subr.bf16.mxu0 %v5184_v32  ;;  %3664 = vmatprep.subr.bf16.mxu1 %v5187_v33  ;;  %v5279_v32 = vld [vmem:[#allocation6 + $0x6ac] ss:$16 sps:$4 sm:$0xff]   ;;  %v5274_v33 = vld [vmem:[#allocation6 + $0x6a0] ss:$16 sps:$4 sm:$0xff]  }
  0xf5   :  { %3337 = vmatpush1.bf16.msra.mxu0 %v5182_v34  ;;  %3665 = vmatpush1.bf16.msra.mxu1 %v5185_v35  ;;  %v5277_v34 = vld [vmem:[#allocation6 + $0x6a8] ss:$16 sps:$4 sm:$0xff]   ;;  %v5282_v35 = vld [vmem:[#allocation6 + $0x6c4] ss:$16 sps:$4 sm:$0xff]  }
  0xf6   :  { %3338 = vmatprep.subr.bf16.mxu0 %v5190_v36  ;;  %3666 = vmatprep.subr.bf16.mxu1 %v5193_v37  ;;  %v5285_v36 = vld [vmem:[#allocation6 + $0x6cc] ss:$16 sps:$4 sm:$0xff]   ;;  %v5280_v37 = vld [vmem:[#allocation6 + $0x6c0] ss:$16 sps:$4 sm:$0xff]  }
  0xf9   :  { %3339 = vmatpush1.bf16.msra.mxu0 %v5188_v38  ;;  %3667 = vmatpush1.bf16.msra.mxu1 %v5191_v39  ;;  %v5283_v38 = vld [vmem:[#allocation6 + $0x6c8] ss:$16 sps:$4 sm:$0xff]   ;;  %v5288_v39 = vld [vmem:[#allocation6 + $0x6e4] ss:$16 sps:$4 sm:$0xff]  }
  0xfa   :  { %3340 = vmatprep.subr.bf16.mxu0 %v5196_v40  ;;  %3668 = vmatprep.subr.bf16.mxu1 %v5199_v41  ;;  %v5291_v40 = vld [vmem:[#allocation6 + $0x6ec] ss:$16 sps:$4 sm:$0xff]   ;;  %v5286_v41 = vld [vmem:[#allocation6 + $0x6e0] ss:$16 sps:$4 sm:$0xff]  }
  0xfd   :  { %3341 = vmatpush1.bf16.msra.mxu0 %v5194_v42  ;;  %3669 = vmatpush1.bf16.msra.mxu1 %v5197_v43  ;;  %v5289_v42 = vld [vmem:[#allocation6 + $0x6e8] ss:$16 sps:$4 sm:$0xff]   ;;  %v5294_v43 = vld [vmem:[#allocation6 + $0x704] ss:$16 sps:$4 sm:$0xff]  }
  0xfe   :  { %3342 = vmatprep.subr.bf16.mxu0 %v5202_v44  ;;  %3670 = vmatprep.subr.bf16.mxu1 %v5205_v45  ;;  %v5297_v44 = vld [vmem:[#allocation6 + $0x70c] ss:$16 sps:$4 sm:$0xff]   ;;  %v5292_v45 = vld [vmem:[#allocation6 + $0x700] ss:$16 sps:$4 sm:$0xff]  }
 0x101   :  { %3343 = vmatpush1.bf16.msra.mxu0 %v5200_v46  ;;  %3671 = vmatpush1.bf16.msra.mxu1 %v5203_v47  ;;  %v5295_v46 = vld [vmem:[#allocation6 + $0x708] ss:$16 sps:$4 sm:$0xff]   ;;  %v5300_v47 = vld [vmem:[#allocation6 + $0x724] ss:$16 sps:$4 sm:$0xff]  }
 0x102   :  { %3344 = vmatprep.subr.bf16.mxu0 %v5208_v48  ;;  %3672 = vmatprep.subr.bf16.mxu1 %v5211_v49  ;;  %v5303_v48 = vld [vmem:[#allocation6 + $0x72c] ss:$16 sps:$4 sm:$0xff]   ;;  %v5298_v49 = vld [vmem:[#allocation6 + $0x720] ss:$16 sps:$4 sm:$0xff]  }
 0x105   :  { %3345 = vmatpush1.bf16.msra.mxu0 %v5206_v50  ;;  %3673 = vmatpush1.bf16.msra.mxu1 %v5209_v51  ;;  %v5301_v50 = vld [vmem:[#allocation6 + $0x728] ss:$16 sps:$4 sm:$0xff]   ;;  %v5306_v51 = vld [vmem:[#allocation6 + $0x744] ss:$16 sps:$4 sm:$0xff]  }
 0x106   :  { %3346 = vmatprep.subr.bf16.mxu0 %v5214_v52  ;;  %3674 = vmatprep.subr.bf16.mxu1 %v5217_v53  ;;  %v5309_v52 = vld [vmem:[#allocation6 + $0x74c] ss:$16 sps:$4 sm:$0xff]   ;;  %v5304_v53 = vld [vmem:[#allocation6 + $0x740] ss:$16 sps:$4 sm:$0xff]  }
 0x109   :  { %3347 = vmatpush1.bf16.msra.mxu0 %v5212_v54  ;;  %3675 = vmatpush1.bf16.msra.mxu1 %v5215_v55  ;;  %v5307_v54 = vld [vmem:[#allocation6 + $0x748] ss:$16 sps:$4 sm:$0xff]   ;;  %v5312_v55 = vld [vmem:[#allocation6 + $0x764] ss:$16 sps:$4 sm:$0xff]  }
 0x10a   :  { %3348 = vmatprep.subr.bf16.mxu0 %v5220_v56  ;;  %3676 = vmatprep.subr.bf16.mxu1 %v5223_v57  ;;  %v5315_v56 = vld [vmem:[#allocation6 + $0x76c] ss:$16 sps:$4 sm:$0xff]   ;;  %v5310_v57 = vld [vmem:[#allocation6 + $0x760] ss:$16 sps:$4 sm:$0xff]  }
 0x10d   :  { %3349 = vmatpush1.bf16.msra.mxu0 %v5218_v58  ;;  %3677 = vmatpush1.bf16.msra.mxu1 %v5221_v59  ;;  %v5313_v58 = vld [vmem:[#allocation6 + $0x768] ss:$16 sps:$4 sm:$0xff]   ;;  %v5318_v59 = vld [vmem:[#allocation6 + $0x784] ss:$16 sps:$4 sm:$0xff]  }
 0x10e   :  { %3350 = vmatprep.subr.bf16.mxu0 %v5226_v60  ;;  %3678 = vmatprep.subr.bf16.mxu1 %v5229_v61  ;;  %v5321_v60 = vld [vmem:[#allocation6 + $0x78c] ss:$16 sps:$4 sm:$0xff]   ;;  %v5316_v61 = vld [vmem:[#allocation6 + $0x780] ss:$16 sps:$4 sm:$0xff]  }
 0x111   :  { %3351 = vmatpush1.bf16.msra.mxu0 %v5224_v62  ;;  %3679 = vmatpush1.bf16.msra.mxu1 %v5227_v63  ;;  %v5319_v62 = vld [vmem:[#allocation6 + $0x788] ss:$16 sps:$4 sm:$0xff]   ;;  %v5324_v63 = vld [vmem:[#allocation6 + $0x7a4] ss:$16 sps:$4 sm:$0xff]  }
 0x112   :  { %3352 = vmatprep.subr.bf16.mxu0 %v5232_v0  ;;  %3680 = vmatprep.subr.bf16.mxu1 %v5235_v1  ;;  %v5327_v0 = vld [vmem:[#allocation6 + $0x7ac] ss:$16 sps:$4 sm:$0xff]   ;;  %v5322_v1 = vld [vmem:[#allocation6 + $0x7a0] ss:$16 sps:$4 sm:$0xff]  }
 0x115   :  { %3353 = vmatpush1.bf16.msra.mxu0 %v5230_v2  ;;  %3681 = vmatpush1.bf16.msra.mxu1 %v5233_v3  ;;  %v5325_v2 = vld [vmem:[#allocation6 + $0x7a8] ss:$16 sps:$4 sm:$0xff]   ;;  %v5330_v3 = vld [vmem:[#allocation6 + $0x7c4] ss:$16 sps:$4 sm:$0xff]  }
 0x116   :  { %3354 = vmatprep.subr.bf16.mxu0 %v5238_v4  ;;  %3682 = vmatprep.subr.bf16.mxu1 %v5241_v5  ;;  %v5333_v4 = vld [vmem:[#allocation6 + $0x7cc] ss:$16 sps:$4 sm:$0xff]   ;;  %v5328_v5 = vld [vmem:[#allocation6 + $0x7c0] ss:$16 sps:$4 sm:$0xff]  }
 0x119   :  { %3355 = vmatpush1.bf16.msra.mxu0 %v5236_v6  ;;  %3683 = vmatpush1.bf16.msra.mxu1 %v5239_v7  ;;  %v5331_v6 = vld [vmem:[#allocation6 + $0x7c8] ss:$16 sps:$4 sm:$0xff]   ;;  %v5336_v7 = vld [vmem:[#allocation6 + $0x7e4] ss:$16 sps:$4 sm:$0xff]  }
 0x11a   :  { %3365 = vmatprep.subr.bf16.mxu0 %v5246_v8  ;;  %3693 = vmatprep.subr.bf16.mxu1 %v5249_v9  ;;  %v5339_v8 = vld [vmem:[#allocation6 + $0x7ec] ss:$16 sps:$4 sm:$0xff]   ;;  %v5334_v9 = vld [vmem:[#allocation6 + $0x7e0] ss:$16 sps:$4 sm:$0xff]  }
 0x11c   :  { %3357 = vmatmul.mubr.bf16.vlgmr.msra.gmra.mrb[0].mxu0 %v4279_v12  ;;  %3685 = vmatmul.mubr.bf16.vlgmr.msra.gmra.mrb[0].mxu1 %v4279_v12  ;;  %v5344_v12 = vld [vmem:[#allocation6 + $0x804] ss:$16 sps:$4 sm:$0xff]  }
 0x11d   :  { %3366 = vmatpush1.bf16.msra.mxu0 %v5244_v10  ;;  %3694 = vmatpush1.bf16.msra.mxu1 %v5247_v13  ;;  %v5337_v10 = vld [vmem:[#allocation6 + $0x7e8] ss:$16 sps:$4 sm:$0xff]   ;;  %v5347_v13 = vld [vmem:[#allocation6 + $0x80c] ss:$16 sps:$4 sm:$0xff]  }
 0x11e   :  { %3367 = vmatprep.subr.bf16.mxu0 %v5252_v15  ;;  %3695 = vmatprep.subr.bf16.mxu1 %v5255_v16  ;;  %v5342_v15 = vld [vmem:[#allocation6 + $0x800] ss:$16 sps:$4 sm:$0xff]   ;;  %v4281_v16 = vcombine.low %v6018_v14, %v6018_v14  ;;  %v5356_v14 = vld [vmem:[#allocation6 + $0x844] ss:$16 sps:$4 sm:$0xff]  }
 0x11f   :  { %3397 = vmatprep.mubr.bf16.mxu0 %v4282_v17  ;;  %3725 = vmatprep.mubr.bf16.mxu1 %v4282_v17  ;;  %v6024_v17 = vld [vmem:[#allocation3 + $0x20] sm:$0xff] }
 0x121   :  { %3368 = vmatpush1.bf16.msra.mxu0 %v5250_v18  ;;  %3696 = vmatpush1.bf16.msra.mxu1 %v5253_v19  ;;  %v5345_v18 = vld [vmem:[#allocation6 + $0x808] ss:$16 sps:$4 sm:$0xff]   ;;  %v5350_v19 = vld [vmem:[#allocation6 + $0x824] ss:$16 sps:$4 sm:$0xff]  }
 0x122   :  { %3369 = vmatprep.subr.bf16.mxu0 %v5258_v20  ;;  %3697 = vmatprep.subr.bf16.mxu1 %v5261_v11  ;;  %v5353_v20 = vld [vmem:[#allocation6 + $0x82c] ss:$16 sps:$4 sm:$0xff]   ;;  %v4284_v11 = vcombine.high %v6024_v17, %v6024_v17 }
 0x125   :  { %3370 = vmatpush1.bf16.msra.mxu0 %v5256_v21  ;;  %3698 = vmatpush1.bf16.msra.mxu1 %v5259_v22  ;;  %v5348_v21 = vld [vmem:[#allocation6 + $0x820] ss:$16 sps:$4 sm:$0xff]   ;;  %v5351_v22 = vld [vmem:[#allocation6 + $0x828] ss:$16 sps:$4 sm:$0xff]  }
 0x126   :  { %3371 = vmatprep.subr.bf16.mxu0 %v5264_v23  ;;  %3699 = vmatprep.subr.bf16.mxu1 %v5267_v24  ;;  %v5359_v23 = vld [vmem:[#allocation6 + $0x84c] ss:$16 sps:$4 sm:$0xff]   ;;  %v5354_v24 = vld [vmem:[#allocation6 + $0x840] ss:$16 sps:$4 sm:$0xff]  }
 0x129   :  { %3372 = vmatpush1.bf16.msra.mxu0 %v5262_v25  ;;  %3700 = vmatpush1.bf16.msra.mxu1 %v5265_v26  ;;  %v5357_v25 = vld [vmem:[#allocation6 + $0x848] ss:$16 sps:$4 sm:$0xff]   ;;  %v5362_v26 = vld [vmem:[#allocation6 + $0x864] ss:$16 sps:$4 sm:$0xff]  }
 0x12a   :  { %3373 = vmatprep.subr.bf16.mxu0 %v5270_v27  ;;  %3701 = vmatprep.subr.bf16.mxu1 %v5273_v28  ;;  %v5365_v27 = vld [vmem:[#allocation6 + $0x86c] ss:$16 sps:$4 sm:$0xff]   ;;  %v5360_v28 = vld [vmem:[#allocation6 + $0x860] ss:$16 sps:$4 sm:$0xff]  }
 0x12d   :  { %3374 = vmatpush1.bf16.msra.mxu0 %v5268_v29  ;;  %3702 = vmatpush1.bf16.msra.mxu1 %v5271_v30  ;;  %v5363_v29 = vld [vmem:[#allocation6 + $0x868] ss:$16 sps:$4 sm:$0xff]   ;;  %v5368_v30 = vld [vmem:[#allocation6 + $0x884] ss:$16 sps:$4 sm:$0xff]  }
 0x12e   :  { %3375 = vmatprep.subr.bf16.mxu0 %v5276_v31  ;;  %3703 = vmatprep.subr.bf16.mxu1 %v5279_v32  ;;  %v5371_v31 = vld [vmem:[#allocation6 + $0x88c] ss:$16 sps:$4 sm:$0xff]   ;;  %v5366_v32 = vld [vmem:[#allocation6 + $0x880] ss:$16 sps:$4 sm:$0xff]  }
 0x131   :  { %3376 = vmatpush1.bf16.msra.mxu0 %v5274_v33  ;;  %3704 = vmatpush1.bf16.msra.mxu1 %v5277_v34  ;;  %v5369_v33 = vld [vmem:[#allocation6 + $0x888] ss:$16 sps:$4 sm:$0xff]   ;;  %v5374_v34 = vld [vmem:[#allocation6 + $0x8a4] ss:$16 sps:$4 sm:$0xff]  }
 0x132   :  { %3377 = vmatprep.subr.bf16.mxu0 %v5282_v35  ;;  %3705 = vmatprep.subr.bf16.mxu1 %v5285_v36  ;;  %v5377_v35 = vld [vmem:[#allocation6 + $0x8ac] ss:$16 sps:$4 sm:$0xff]   ;;  %v5372_v36 = vld [vmem:[#allocation6 + $0x8a0] ss:$16 sps:$4 sm:$0xff]  }
 0x135   :  { %3378 = vmatpush1.bf16.msra.mxu0 %v5280_v37  ;;  %3706 = vmatpush1.bf16.msra.mxu1 %v5283_v38  ;;  %v5375_v37 = vld [vmem:[#allocation6 + $0x8a8] ss:$16 sps:$4 sm:$0xff]   ;;  %v5380_v38 = vld [vmem:[#allocation6 + $0x8c4] ss:$16 sps:$4 sm:$0xff]  }
 0x136   :  { %3379 = vmatprep.subr.bf16.mxu0 %v5288_v39  ;;  %3707 = vmatprep.subr.bf16.mxu1 %v5291_v40  ;;  %v5383_v39 = vld [vmem:[#allocation6 + $0x8cc] ss:$16 sps:$4 sm:$0xff]   ;;  %v5378_v40 = vld [vmem:[#allocation6 + $0x8c0] ss:$16 sps:$4 sm:$0xff]  }
 0x139   :  { %3380 = vmatpush1.bf16.msra.mxu0 %v5286_v41  ;;  %3708 = vmatpush1.bf16.msra.mxu1 %v5289_v42  ;;  %v5381_v41 = vld [vmem:[#allocation6 + $0x8c8] ss:$16 sps:$4 sm:$0xff]   ;;  %v5386_v42 = vld [vmem:[#allocation6 + $0x8e4] ss:$16 sps:$4 sm:$0xff]  }
 0x13a   :  { %3381 = vmatprep.subr.bf16.mxu0 %v5294_v43  ;;  %3709 = vmatprep.subr.bf16.mxu1 %v5297_v44  ;;  %v5389_v43 = vld [vmem:[#allocation6 + $0x8ec] ss:$16 sps:$4 sm:$0xff]   ;;  %v5384_v44 = vld [vmem:[#allocation6 + $0x8e0] ss:$16 sps:$4 sm:$0xff]  }
 0x13d   :  { %3382 = vmatpush1.bf16.msra.mxu0 %v5292_v45  ;;  %3710 = vmatpush1.bf16.msra.mxu1 %v5295_v46  ;;  %v5387_v45 = vld [vmem:[#allocation6 + $0x8e8] ss:$16 sps:$4 sm:$0xff]   ;;  %v5392_v46 = vld [vmem:[#allocation6 + $0x904] ss:$16 sps:$4 sm:$0xff]  }
 0x13e   :  { %3383 = vmatprep.subr.bf16.mxu0 %v5300_v47  ;;  %3711 = vmatprep.subr.bf16.mxu1 %v5303_v48  ;;  %v5395_v47 = vld [vmem:[#allocation6 + $0x90c] ss:$16 sps:$4 sm:$0xff]   ;;  %v5390_v48 = vld [vmem:[#allocation6 + $0x900] ss:$16 sps:$4 sm:$0xff]  }
 0x141   :  { %3384 = vmatpush1.bf16.msra.mxu0 %v5298_v49  ;;  %3712 = vmatpush1.bf16.msra.mxu1 %v5301_v50  ;;  %v5393_v49 = vld [vmem:[#allocation6 + $0x908] ss:$16 sps:$4 sm:$0xff]   ;;  %v5398_v50 = vld [vmem:[#allocation6 + $0x924] ss:$16 sps:$4 sm:$0xff]  }
 0x142   :  { %3385 = vmatprep.subr.bf16.mxu0 %v5306_v51  ;;  %3713 = vmatprep.subr.bf16.mxu1 %v5309_v52  ;;  %v5401_v51 = vld [vmem:[#allocation6 + $0x92c] ss:$16 sps:$4 sm:$0xff]   ;;  %v5396_v52 = vld [vmem:[#allocation6 + $0x920] ss:$16 sps:$4 sm:$0xff]  }
 0x145   :  { %3386 = vmatpush1.bf16.msra.mxu0 %v5304_v53  ;;  %3714 = vmatpush1.bf16.msra.mxu1 %v5307_v54  ;;  %v5399_v53 = vld [vmem:[#allocation6 + $0x928] ss:$16 sps:$4 sm:$0xff]   ;;  %v5404_v54 = vld [vmem:[#allocation6 + $0x944] ss:$16 sps:$4 sm:$0xff]  }
 0x146   :  { %3387 = vmatprep.subr.bf16.mxu0 %v5312_v55  ;;  %3715 = vmatprep.subr.bf16.mxu1 %v5315_v56  ;;  %v5407_v55 = vld [vmem:[#allocation6 + $0x94c] ss:$16 sps:$4 sm:$0xff]   ;;  %v5402_v56 = vld [vmem:[#allocation6 + $0x940] ss:$16 sps:$4 sm:$0xff]  }
 0x149   :  { %3388 = vmatpush1.bf16.msra.mxu0 %v5310_v57  ;;  %3716 = vmatpush1.bf16.msra.mxu1 %v5313_v58  ;;  %v5405_v57 = vld [vmem:[#allocation6 + $0x948] ss:$16 sps:$4 sm:$0xff]   ;;  %v5410_v58 = vld [vmem:[#allocation6 + $0x964] ss:$16 sps:$4 sm:$0xff]  }
 0x14a   :  { %3389 = vmatprep.subr.bf16.mxu0 %v5318_v59  ;;  %3717 = vmatprep.subr.bf16.mxu1 %v5321_v60  ;;  %v5413_v59 = vld [vmem:[#allocation6 + $0x96c] ss:$16 sps:$4 sm:$0xff]   ;;  %v5408_v60 = vld [vmem:[#allocation6 + $0x960] ss:$16 sps:$4 sm:$0xff]  }
 0x14d   :  { %3390 = vmatpush1.bf16.msra.mxu0 %v5316_v61  ;;  %3718 = vmatpush1.bf16.msra.mxu1 %v5319_v62  ;;  %v5411_v61 = vld [vmem:[#allocation6 + $0x968] ss:$16 sps:$4 sm:$0xff]   ;;  %v5416_v62 = vld [vmem:[#allocation6 + $0x984] ss:$16 sps:$4 sm:$0xff]  }
 0x14e   :  { %3391 = vmatprep.subr.bf16.mxu0 %v5324_v63  ;;  %3719 = vmatprep.subr.bf16.mxu1 %v5327_v0  ;;  %v5419_v63 = vld [vmem:[#allocation6 + $0x98c] ss:$16 sps:$4 sm:$0xff]   ;;  %v5414_v0 = vld [vmem:[#allocation6 + $0x980] ss:$16 sps:$4 sm:$0xff]  }
 0x151   :  { %3392 = vmatpush1.bf16.msra.mxu0 %v5322_v1  ;;  %3720 = vmatpush1.bf16.msra.mxu1 %v5325_v2  ;;  %v5417_v1 = vld [vmem:[#allocation6 + $0x988] ss:$16 sps:$4 sm:$0xff]   ;;  %v5422_v2 = vld [vmem:[#allocation6 + $0x9a4] ss:$16 sps:$4 sm:$0xff]  }
 0x152   :  { %3393 = vmatprep.subr.bf16.mxu0 %v5330_v3  ;;  %3721 = vmatprep.subr.bf16.mxu1 %v5333_v4  ;;  %v5425_v3 = vld [vmem:[#allocation6 + $0x9ac] ss:$16 sps:$4 sm:$0xff]   ;;  %v5420_v4 = vld [vmem:[#allocation6 + $0x9a0] ss:$16 sps:$4 sm:$0xff]  }
 0x155   :  { %3394 = vmatpush1.bf16.msra.mxu0 %v5328_v5  ;;  %3722 = vmatpush1.bf16.msra.mxu1 %v5331_v6  ;;  %v5423_v5 = vld [vmem:[#allocation6 + $0x9a8] ss:$16 sps:$4 sm:$0xff]   ;;  %v5428_v6 = vld [vmem:[#allocation6 + $0x9c4] ss:$16 sps:$4 sm:$0xff]  }
 0x156   :  { %3395 = vmatprep.subr.bf16.mxu0 %v5336_v7  ;;  %3723 = vmatprep.subr.bf16.mxu1 %v5339_v8  ;;  %v5431_v7 = vld [vmem:[#allocation6 + $0x9cc] ss:$16 sps:$4 sm:$0xff]   ;;  %v5426_v8 = vld [vmem:[#allocation6 + $0x9c0] ss:$16 sps:$4 sm:$0xff]  }
 0x159   :  { %3396 = vmatpush1.bf16.msra.mxu0 %v5334_v9  ;;  %3724 = vmatpush1.bf16.msra.mxu1 %v5337_v10  ;;  %v5429_v9 = vld [vmem:[#allocation6 + $0x9c8] ss:$16 sps:$4 sm:$0xff]   ;;  %v5434_v10 = vld [vmem:[#allocation6 + $0x9e4] ss:$16 sps:$4 sm:$0xff]  }
 0x15a   :  { %3406 = vmatprep.subr.bf16.mxu0 %v5344_v12  ;;  %3734 = vmatprep.subr.bf16.mxu1 %v5347_v13  ;;  %v5437_v12 = vld [vmem:[#allocation6 + $0x9ec] ss:$16 sps:$4 sm:$0xff]   ;;  %v5432_v13 = vld [vmem:[#allocation6 + $0x9e0] ss:$16 sps:$4 sm:$0xff]  }
 0x15c   :  { %3398 = vmatmul.mubr.bf16.vlgmr.msra.gmra.mrb[0].mxu0 %v4281_v16  ;;  %3726 = vmatmul.mubr.bf16.vlgmr.msra.gmra.mrb[0].mxu1 %v4281_v16  ;;  %v5442_v16 = vld [vmem:[#allocation6 + $0xa04] ss:$16 sps:$4 sm:$0xff]  }
 0x15d   :  { %3407 = vmatpush1.bf16.msra.mxu0 %v5342_v15  ;;  %3735 = vmatpush1.bf16.msra.mxu1 %v5345_v18  ;;  %v5435_v15 = vld [vmem:[#allocation6 + $0x9e8] ss:$16 sps:$4 sm:$0xff]   ;;  %v5445_v18 = vld [vmem:[#allocation6 + $0xa0c] ss:$16 sps:$4 sm:$0xff]  }
 0x15e   :  { %3408 = vmatprep.subr.bf16.mxu0 %v5350_v19  ;;  %3736 = vmatprep.subr.bf16.mxu1 %v5353_v20  ;;  %v6028_v19 = vld [vmem:[#allocation3 + $0x28] sm:$0xff]  ;;  %v4283_v20 = vcombine.low %v6024_v17, %v6024_v17  ;;  %v5454_v17 = vld [vmem:[#allocation6 + $0xa44] ss:$16 sps:$4 sm:$0xff]  }
 0x15f   :  { %3438 = vmatprep.mubr.bf16.mxu0 %v4284_v11  ;;  %3766 = vmatprep.mubr.bf16.mxu1 %v4284_v11  ;;  %v5440_v11 = vld [vmem:[#allocation6 + $0xa00] ss:$16 sps:$4 sm:$0xff]  }
 0x161   :  { %3409 = vmatpush1.bf16.msra.mxu0 %v5348_v21  ;;  %3737 = vmatpush1.bf16.msra.mxu1 %v5351_v22  ;;  %v5443_v21 = vld [vmem:[#allocation6 + $0xa08] ss:$16 sps:$4 sm:$0xff]   ;;  %v5448_v22 = vld [vmem:[#allocation6 + $0xa24] ss:$16 sps:$4 sm:$0xff]  }
 0x162   :  { %3410 = vmatprep.subr.bf16.mxu0 %v5356_v14  ;;  %3738 = vmatprep.subr.bf16.mxu1 %v5359_v23  ;;  %v5451_v14 = vld [vmem:[#allocation6 + $0xa2c] ss:$16 sps:$4 sm:$0xff]   ;;  %v4286_v23 = vcombine.high %v6028_v19, %v6028_v19 }
 0x165   :  { %3411 = vmatpush1.bf16.msra.mxu0 %v5354_v24  ;;  %3739 = vmatpush1.bf16.msra.mxu1 %v5357_v25  ;;  %v5446_v24 = vld [vmem:[#allocation6 + $0xa20] ss:$16 sps:$4 sm:$0xff]   ;;  %v5449_v25 = vld [vmem:[#allocation6 + $0xa28] ss:$16 sps:$4 sm:$0xff]  }
 0x166   :  { %3412 = vmatprep.subr.bf16.mxu0 %v5362_v26  ;;  %3740 = vmatprep.subr.bf16.mxu1 %v5365_v27  ;;  %v5457_v26 = vld [vmem:[#allocation6 + $0xa4c] ss:$16 sps:$4 sm:$0xff]   ;;  %v5452_v27 = vld [vmem:[#allocation6 + $0xa40] ss:$16 sps:$4 sm:$0xff]  }
 0x169   :  { %3413 = vmatpush1.bf16.msra.mxu0 %v5360_v28  ;;  %3741 = vmatpush1.bf16.msra.mxu1 %v5363_v29  ;;  %v5455_v28 = vld [vmem:[#allocation6 + $0xa48] ss:$16 sps:$4 sm:$0xff]   ;;  %v5460_v29 = vld [vmem:[#allocation6 + $0xa64] ss:$16 sps:$4 sm:$0xff]  }
 0x16a   :  { %3414 = vmatprep.subr.bf16.mxu0 %v5368_v30  ;;  %3742 = vmatprep.subr.bf16.mxu1 %v5371_v31  ;;  %v5463_v30 = vld [vmem:[#allocation6 + $0xa6c] ss:$16 sps:$4 sm:$0xff]   ;;  %v5458_v31 = vld [vmem:[#allocation6 + $0xa60] ss:$16 sps:$4 sm:$0xff]  }
 0x16d   :  { %3415 = vmatpush1.bf16.msra.mxu0 %v5366_v32  ;;  %3743 = vmatpush1.bf16.msra.mxu1 %v5369_v33  ;;  %v5461_v32 = vld [vmem:[#allocation6 + $0xa68] ss:$16 sps:$4 sm:$0xff]   ;;  %v5466_v33 = vld [vmem:[#allocation6 + $0xa84] ss:$16 sps:$4 sm:$0xff]  }
 0x16e   :  { %3416 = vmatprep.subr.bf16.mxu0 %v5374_v34  ;;  %3744 = vmatprep.subr.bf16.mxu1 %v5377_v35  ;;  %v5469_v34 = vld [vmem:[#allocation6 + $0xa8c] ss:$16 sps:$4 sm:$0xff]   ;;  %v5464_v35 = vld [vmem:[#allocation6 + $0xa80] ss:$16 sps:$4 sm:$0xff]  }
 0x171   :  { %3417 = vmatpush1.bf16.msra.mxu0 %v5372_v36  ;;  %3745 = vmatpush1.bf16.msra.mxu1 %v5375_v37  ;;  %v5467_v36 = vld [vmem:[#allocation6 + $0xa88] ss:$16 sps:$4 sm:$0xff]   ;;  %v5472_v37 = vld [vmem:[#allocation6 + $0xaa4] ss:$16 sps:$4 sm:$0xff]  }
 0x172   :  { %3418 = vmatprep.subr.bf16.mxu0 %v5380_v38  ;;  %3746 = vmatprep.subr.bf16.mxu1 %v5383_v39  ;;  %v5475_v38 = vld [vmem:[#allocation6 + $0xaac] ss:$16 sps:$4 sm:$0xff]   ;;  %v5470_v39 = vld [vmem:[#allocation6 + $0xaa0] ss:$16 sps:$4 sm:$0xff]  }
 0x175   :  { %3419 = vmatpush1.bf16.msra.mxu0 %v5378_v40  ;;  %3747 = vmatpush1.bf16.msra.mxu1 %v5381_v41  ;;  %v5473_v40 = vld [vmem:[#allocation6 + $0xaa8] ss:$16 sps:$4 sm:$0xff]   ;;  %v5478_v41 = vld [vmem:[#allocation6 + $0xac4] ss:$16 sps:$4 sm:$0xff]  }
 0x176   :  { %3420 = vmatprep.subr.bf16.mxu0 %v5386_v42  ;;  %3748 = vmatprep.subr.bf16.mxu1 %v5389_v43  ;;  %v5481_v42 = vld [vmem:[#allocation6 + $0xacc] ss:$16 sps:$4 sm:$0xff]   ;;  %v5476_v43 = vld [vmem:[#allocation6 + $0xac0] ss:$16 sps:$4 sm:$0xff]  }
 0x179   :  { %3421 = vmatpush1.bf16.msra.mxu0 %v5384_v44  ;;  %3749 = vmatpush1.bf16.msra.mxu1 %v5387_v45  ;;  %v5479_v44 = vld [vmem:[#allocation6 + $0xac8] ss:$16 sps:$4 sm:$0xff]   ;;  %v5484_v45 = vld [vmem:[#allocation6 + $0xae4] ss:$16 sps:$4 sm:$0xff]  }
 0x17a   :  { %3422 = vmatprep.subr.bf16.mxu0 %v5392_v46  ;;  %3750 = vmatprep.subr.bf16.mxu1 %v5395_v47  ;;  %v5487_v46 = vld [vmem:[#allocation6 + $0xaec] ss:$16 sps:$4 sm:$0xff]   ;;  %v5482_v47 = vld [vmem:[#allocation6 + $0xae0] ss:$16 sps:$4 sm:$0xff]  }
 0x17d   :  { %3423 = vmatpush1.bf16.msra.mxu0 %v5390_v48  ;;  %3751 = vmatpush1.bf16.msra.mxu1 %v5393_v49  ;;  %v5485_v48 = vld [vmem:[#allocation6 + $0xae8] ss:$16 sps:$4 sm:$0xff]   ;;  %v5490_v49 = vld [vmem:[#allocation6 + $0xb04] ss:$16 sps:$4 sm:$0xff]  }
 0x17e   :  { %3424 = vmatprep.subr.bf16.mxu0 %v5398_v50  ;;  %3752 = vmatprep.subr.bf16.mxu1 %v5401_v51  ;;  %v5493_v50 = vld [vmem:[#allocation6 + $0xb0c] ss:$16 sps:$4 sm:$0xff]   ;;  %v5488_v51 = vld [vmem:[#allocation6 + $0xb00] ss:$16 sps:$4 sm:$0xff]  }
 0x181   :  { %3425 = vmatpush1.bf16.msra.mxu0 %v5396_v52  ;;  %3753 = vmatpush1.bf16.msra.mxu1 %v5399_v53  ;;  %v5491_v52 = vld [vmem:[#allocation6 + $0xb08] ss:$16 sps:$4 sm:$0xff]   ;;  %v5496_v53 = vld [vmem:[#allocation6 + $0xb24] ss:$16 sps:$4 sm:$0xff]  }
 0x182   :  { %3426 = vmatprep.subr.bf16.mxu0 %v5404_v54  ;;  %3754 = vmatprep.subr.bf16.mxu1 %v5407_v55  ;;  %v5499_v54 = vld [vmem:[#allocation6 + $0xb2c] ss:$16 sps:$4 sm:$0xff]   ;;  %v5494_v55 = vld [vmem:[#allocation6 + $0xb20] ss:$16 sps:$4 sm:$0xff]  }
 0x185   :  { %3427 = vmatpush1.bf16.msra.mxu0 %v5402_v56  ;;  %3755 = vmatpush1.bf16.msra.mxu1 %v5405_v57  ;;  %v5497_v56 = vld [vmem:[#allocation6 + $0xb28] ss:$16 sps:$4 sm:$0xff]   ;;  %v5502_v57 = vld [vmem:[#allocation6 + $0xb44] ss:$16 sps:$4 sm:$0xff]  }
 0x186   :  { %3428 = vmatprep.subr.bf16.mxu0 %v5410_v58  ;;  %3756 = vmatprep.subr.bf16.mxu1 %v5413_v59  ;;  %v5505_v58 = vld [vmem:[#allocation6 + $0xb4c] ss:$16 sps:$4 sm:$0xff]   ;;  %v5500_v59 = vld [vmem:[#allocation6 + $0xb40] ss:$16 sps:$4 sm:$0xff]  }
 0x189   :  { %3429 = vmatpush1.bf16.msra.mxu0 %v5408_v60  ;;  %3757 = vmatpush1.bf16.msra.mxu1 %v5411_v61  ;;  %v5503_v60 = vld [vmem:[#allocation6 + $0xb48] ss:$16 sps:$4 sm:$0xff]   ;;  %v5508_v61 = vld [vmem:[#allocation6 + $0xb64] ss:$16 sps:$4 sm:$0xff]  }
 0x18a   :  { %3430 = vmatprep.subr.bf16.mxu0 %v5416_v62  ;;  %3758 = vmatprep.subr.bf16.mxu1 %v5419_v63  ;;  %v5511_v62 = vld [vmem:[#allocation6 + $0xb6c] ss:$16 sps:$4 sm:$0xff]   ;;  %v5506_v63 = vld [vmem:[#allocation6 + $0xb60] ss:$16 sps:$4 sm:$0xff]  }
 0x18d   :  { %3431 = vmatpush1.bf16.msra.mxu0 %v5414_v0  ;;  %3759 = vmatpush1.bf16.msra.mxu1 %v5417_v1  ;;  %v5509_v0 = vld [vmem:[#allocation6 + $0xb68] ss:$16 sps:$4 sm:$0xff]   ;;  %v5514_v1 = vld [vmem:[#allocation6 + $0xb84] ss:$16 sps:$4 sm:$0xff]  }
 0x18e   :  { %3432 = vmatprep.subr.bf16.mxu0 %v5422_v2  ;;  %3760 = vmatprep.subr.bf16.mxu1 %v5425_v3  ;;  %v5517_v2 = vld [vmem:[#allocation6 + $0xb8c] ss:$16 sps:$4 sm:$0xff]   ;;  %v5512_v3 = vld [vmem:[#allocation6 + $0xb80] ss:$16 sps:$4 sm:$0xff]  }
 0x191   :  { %3433 = vmatpush1.bf16.msra.mxu0 %v5420_v4  ;;  %3761 = vmatpush1.bf16.msra.mxu1 %v5423_v5  ;;  %v5515_v4 = vld [vmem:[#allocation6 + $0xb88] ss:$16 sps:$4 sm:$0xff]   ;;  %v5520_v5 = vld [vmem:[#allocation6 + $0xba4] ss:$16 sps:$4 sm:$0xff]  }
 0x192   :  { %3434 = vmatprep.subr.bf16.mxu0 %v5428_v6  ;;  %3762 = vmatprep.subr.bf16.mxu1 %v5431_v7  ;;  %v5523_v6 = vld [vmem:[#allocation6 + $0xbac] ss:$16 sps:$4 sm:$0xff]   ;;  %v5518_v7 = vld [vmem:[#allocation6 + $0xba0] ss:$16 sps:$4 sm:$0xff]  }
 0x195   :  { %3435 = vmatpush1.bf16.msra.mxu0 %v5426_v8  ;;  %3763 = vmatpush1.bf16.msra.mxu1 %v5429_v9  ;;  %v5521_v8 = vld [vmem:[#allocation6 + $0xba8] ss:$16 sps:$4 sm:$0xff]   ;;  %v5526_v9 = vld [vmem:[#allocation6 + $0xbc4] ss:$16 sps:$4 sm:$0xff]  }
 0x196   :  { %3436 = vmatprep.subr.bf16.mxu0 %v5434_v10  ;;  %3764 = vmatprep.subr.bf16.mxu1 %v5437_v12  ;;  %v5529_v10 = vld [vmem:[#allocation6 + $0xbcc] ss:$16 sps:$4 sm:$0xff]   ;;  %v5524_v12 = vld [vmem:[#allocation6 + $0xbc0] ss:$16 sps:$4 sm:$0xff]  }
 0x199   :  { %3437 = vmatpush1.bf16.msra.mxu0 %v5432_v13  ;;  %3765 = vmatpush1.bf16.msra.mxu1 %v5435_v15  ;;  %v5527_v13 = vld [vmem:[#allocation6 + $0xbc8] ss:$16 sps:$4 sm:$0xff]   ;;  %v5532_v15 = vld [vmem:[#allocation6 + $0xbe4] ss:$16 sps:$4 sm:$0xff]  }
 0x19a   :  { %3447 = vmatprep.subr.bf16.mxu0 %v5442_v16  ;;  %3775 = vmatprep.subr.bf16.mxu1 %v5445_v18  ;;  %v5535_v16 = vld [vmem:[#allocation6 + $0xbec] ss:$16 sps:$4 sm:$0xff]   ;;  %v5530_v18 = vld [vmem:[#allocation6 + $0xbe0] ss:$16 sps:$4 sm:$0xff]  }
 0x19c   :  { %3439 = vmatmul.mubr.bf16.vlgmr.msra.gmra.mrb[0].mxu0 %v4283_v20  ;;  %3767 = vmatmul.mubr.bf16.vlgmr.msra.gmra.mrb[0].mxu1 %v4283_v20  ;;  %v5533_v20 = vld [vmem:[#allocation6 + $0xbe8] ss:$16 sps:$4 sm:$0xff]  }
 0x19d   :  { %3448 = vmatpush1.bf16.msra.mxu0 %v5440_v11  ;;  %3776 = vmatpush1.bf16.msra.mxu1 %v5443_v21  ;;  %v5540_v11 = vld [vmem:[#allocation6 + $0xc04] ss:$16 sps:$4 sm:$0xff]   ;;  %v5543_v21 = vld [vmem:[#allocation6 + $0xc0c] ss:$16 sps:$4 sm:$0xff]  }
 0x19e   :  { %3449 = vmatprep.subr.bf16.mxu0 %v5448_v22  ;;  %3777 = vmatprep.subr.bf16.mxu1 %v5451_v14  ;;  %v4285_v22 = vcombine.low %v6028_v19, %v6028_v19  ;;  %v6036_v14 = vld [vmem:[#allocation3 + $0x30] sm:$0xff] }
 0x19f   :  { %3479 = vmatprep.mubr.bf16.mxu0 %v4286_v23  ;;  %3807 = vmatprep.mubr.bf16.mxu1 %v4286_v23  ;;  %v5538_v23 = vld [vmem:[#allocation6 + $0xc00] ss:$16 sps:$4 sm:$0xff]   ;;  %v5552_v19 = vld [vmem:[#allocation6 + $0xc44] ss:$16 sps:$4 sm:$0xff]  }
 0x1a1   :  { %3450 = vmatpush1.bf16.msra.mxu0 %v5446_v24  ;;  %3778 = vmatpush1.bf16.msra.mxu1 %v5449_v25  ;;  %v5541_v24 = vld [vmem:[#allocation6 + $0xc08] ss:$16 sps:$4 sm:$0xff]   ;;  %v5546_v25 = vld [vmem:[#allocation6 + $0xc24] ss:$16 sps:$4 sm:$0xff]  }
 0x1a2   :  { %3451 = vmatprep.subr.bf16.mxu0 %v5454_v17  ;;  %3779 = vmatprep.subr.bf16.mxu1 %v5457_v26  ;;  %v5549_v17 = vld [vmem:[#allocation6 + $0xc2c] ss:$16 sps:$4 sm:$0xff]   ;;  %v4288_v26 = vcombine.high %v6036_v14, %v6036_v14 }
 0x1a5   :  { %3452 = vmatpush1.bf16.msra.mxu0 %v5452_v27  ;;  %3780 = vmatpush1.bf16.msra.mxu1 %v5455_v28  ;;  %v5544_v27 = vld [vmem:[#allocation6 + $0xc20] ss:$16 sps:$4 sm:$0xff]   ;;  %v5547_v28 = vld [vmem:[#allocation6 + $0xc28] ss:$16 sps:$4 sm:$0xff]  }
 0x1a6   :  { %3453 = vmatprep.subr.bf16.mxu0 %v5460_v29  ;;  %3781 = vmatprep.subr.bf16.mxu1 %v5463_v30  ;;  %v5555_v29 = vld [vmem:[#allocation6 + $0xc4c] ss:$16 sps:$4 sm:$0xff]   ;;  %v5550_v30 = vld [vmem:[#allocation6 + $0xc40] ss:$16 sps:$4 sm:$0xff]  }
 0x1a9   :  { %3454 = vmatpush1.bf16.msra.mxu0 %v5458_v31  ;;  %3782 = vmatpush1.bf16.msra.mxu1 %v5461_v32  ;;  %v5553_v31 = vld [vmem:[#allocation6 + $0xc48] ss:$16 sps:$4 sm:$0xff]   ;;  %v5558_v32 = vld [vmem:[#allocation6 + $0xc64] ss:$16 sps:$4 sm:$0xff]  }
 0x1aa   :  { %3455 = vmatprep.subr.bf16.mxu0 %v5466_v33  ;;  %3783 = vmatprep.subr.bf16.mxu1 %v5469_v34  ;;  %v5561_v33 = vld [vmem:[#allocation6 + $0xc6c] ss:$16 sps:$4 sm:$0xff]   ;;  %v5556_v34 = vld [vmem:[#allocation6 + $0xc60] ss:$16 sps:$4 sm:$0xff]  }
 0x1ad   :  { %3456 = vmatpush1.bf16.msra.mxu0 %v5464_v35  ;;  %3784 = vmatpush1.bf16.msra.mxu1 %v5467_v36  ;;  %v5559_v35 = vld [vmem:[#allocation6 + $0xc68] ss:$16 sps:$4 sm:$0xff]   ;;  %v5564_v36 = vld [vmem:[#allocation6 + $0xc84] ss:$16 sps:$4 sm:$0xff]  }
 0x1ae   :  { %3457 = vmatprep.subr.bf16.mxu0 %v5472_v37  ;;  %3785 = vmatprep.subr.bf16.mxu1 %v5475_v38  ;;  %v5567_v37 = vld [vmem:[#allocation6 + $0xc8c] ss:$16 sps:$4 sm:$0xff]   ;;  %v5562_v38 = vld [vmem:[#allocation6 + $0xc80] ss:$16 sps:$4 sm:$0xff]  }
 0x1b1   :  { %3458 = vmatpush1.bf16.msra.mxu0 %v5470_v39  ;;  %3786 = vmatpush1.bf16.msra.mxu1 %v5473_v40  ;;  %v5565_v39 = vld [vmem:[#allocation6 + $0xc88] ss:$16 sps:$4 sm:$0xff]   ;;  %v5570_v40 = vld [vmem:[#allocation6 + $0xca4] ss:$16 sps:$4 sm:$0xff]  }
 0x1b2   :  { %3459 = vmatprep.subr.bf16.mxu0 %v5478_v41  ;;  %3787 = vmatprep.subr.bf16.mxu1 %v5481_v42  ;;  %v5573_v41 = vld [vmem:[#allocation6 + $0xcac] ss:$16 sps:$4 sm:$0xff]   ;;  %v5568_v42 = vld [vmem:[#allocation6 + $0xca0] ss:$16 sps:$4 sm:$0xff]  }
 0x1b5   :  { %3460 = vmatpush1.bf16.msra.mxu0 %v5476_v43  ;;  %3788 = vmatpush1.bf16.msra.mxu1 %v5479_v44  ;;  %v5571_v43 = vld [vmem:[#allocation6 + $0xca8] ss:$16 sps:$4 sm:$0xff]   ;;  %v5576_v44 = vld [vmem:[#allocation6 + $0xcc4] ss:$16 sps:$4 sm:$0xff]  }
 0x1b6   :  { %3461 = vmatprep.subr.bf16.mxu0 %v5484_v45  ;;  %3789 = vmatprep.subr.bf16.mxu1 %v5487_v46  ;;  %v5579_v45 = vld [vmem:[#allocation6 + $0xccc] ss:$16 sps:$4 sm:$0xff]   ;;  %v5574_v46 = vld [vmem:[#allocation6 + $0xcc0] ss:$16 sps:$4 sm:$0xff]  }
 0x1b9   :  { %3462 = vmatpush1.bf16.msra.mxu0 %v5482_v47  ;;  %3790 = vmatpush1.bf16.msra.mxu1 %v5485_v48  ;;  %v5577_v47 = vld [vmem:[#allocation6 + $0xcc8] ss:$16 sps:$4 sm:$0xff]   ;;  %v5582_v48 = vld [vmem:[#allocation6 + $0xce4] ss:$16 sps:$4 sm:$0xff]  }
 0x1ba   :  { %3463 = vmatprep.subr.bf16.mxu0 %v5490_v49  ;;  %3791 = vmatprep.subr.bf16.mxu1 %v5493_v50  ;;  %v5585_v49 = vld [vmem:[#allocation6 + $0xcec] ss:$16 sps:$4 sm:$0xff]   ;;  %v5580_v50 = vld [vmem:[#allocation6 + $0xce0] ss:$16 sps:$4 sm:$0xff]  }
 0x1bd   :  { %3464 = vmatpush1.bf16.msra.mxu0 %v5488_v51  ;;  %3792 = vmatpush1.bf16.msra.mxu1 %v5491_v52  ;;  %v5583_v51 = vld [vmem:[#allocation6 + $0xce8] ss:$16 sps:$4 sm:$0xff]   ;;  %v5588_v52 = vld [vmem:[#allocation6 + $0xd04] ss:$16 sps:$4 sm:$0xff]  }
 0x1be   :  { %3465 = vmatprep.subr.bf16.mxu0 %v5496_v53  ;;  %3793 = vmatprep.subr.bf16.mxu1 %v5499_v54  ;;  %v5591_v53 = vld [vmem:[#allocation6 + $0xd0c] ss:$16 sps:$4 sm:$0xff]   ;;  %v5586_v54 = vld [vmem:[#allocation6 + $0xd00] ss:$16 sps:$4 sm:$0xff]  }
 0x1c1   :  { %3466 = vmatpush1.bf16.msra.mxu0 %v5494_v55  ;;  %3794 = vmatpush1.bf16.msra.mxu1 %v5497_v56  ;;  %v5589_v55 = vld [vmem:[#allocation6 + $0xd08] ss:$16 sps:$4 sm:$0xff]   ;;  %v5594_v56 = vld [vmem:[#allocation6 + $0xd24] ss:$16 sps:$4 sm:$0xff]  }
 0x1c2   :  { %3467 = vmatprep.subr.bf16.mxu0 %v5502_v57  ;;  %3795 = vmatprep.subr.bf16.mxu1 %v5505_v58  ;;  %v5597_v57 = vld [vmem:[#allocation6 + $0xd2c] ss:$16 sps:$4 sm:$0xff]   ;;  %v5592_v58 = vld [vmem:[#allocation6 + $0xd20] ss:$16 sps:$4 sm:$0xff]  }
 0x1c5   :  { %3468 = vmatpush1.bf16.msra.mxu0 %v5500_v59  ;;  %3796 = vmatpush1.bf16.msra.mxu1 %v5503_v60  ;;  %v5595_v59 = vld [vmem:[#allocation6 + $0xd28] ss:$16 sps:$4 sm:$0xff]   ;;  %v5600_v60 = vld [vmem:[#allocation6 + $0xd44] ss:$16 sps:$4 sm:$0xff]  }
 0x1c6   :  { %3469 = vmatprep.subr.bf16.mxu0 %v5508_v61  ;;  %3797 = vmatprep.subr.bf16.mxu1 %v5511_v62  ;;  %v5603_v61 = vld [vmem:[#allocation6 + $0xd4c] ss:$16 sps:$4 sm:$0xff]   ;;  %v5598_v62 = vld [vmem:[#allocation6 + $0xd40] ss:$16 sps:$4 sm:$0xff]  }
 0x1c9   :  { %3470 = vmatpush1.bf16.msra.mxu0 %v5506_v63  ;;  %3798 = vmatpush1.bf16.msra.mxu1 %v5509_v0  ;;  %v5601_v63 = vld [vmem:[#allocation6 + $0xd48] ss:$16 sps:$4 sm:$0xff]   ;;  %v5606_v0 = vld [vmem:[#allocation6 + $0xd64] ss:$16 sps:$4 sm:$0xff]  }
 0x1ca   :  { %3471 = vmatprep.subr.bf16.mxu0 %v5514_v1  ;;  %3799 = vmatprep.subr.bf16.mxu1 %v5517_v2  ;;  %v5609_v1 = vld [vmem:[#allocation6 + $0xd6c] ss:$16 sps:$4 sm:$0xff]   ;;  %v5604_v2 = vld [vmem:[#allocation6 + $0xd60] ss:$16 sps:$4 sm:$0xff]  }
 0x1cd   :  { %3472 = vmatpush1.bf16.msra.mxu0 %v5512_v3  ;;  %3800 = vmatpush1.bf16.msra.mxu1 %v5515_v4  ;;  %v5607_v3 = vld [vmem:[#allocation6 + $0xd68] ss:$16 sps:$4 sm:$0xff]   ;;  %v5612_v4 = vld [vmem:[#allocation6 + $0xd84] ss:$16 sps:$4 sm:$0xff]  }
 0x1ce   :  { %3473 = vmatprep.subr.bf16.mxu0 %v5520_v5  ;;  %3801 = vmatprep.subr.bf16.mxu1 %v5523_v6  ;;  %v5615_v5 = vld [vmem:[#allocation6 + $0xd8c] ss:$16 sps:$4 sm:$0xff]   ;;  %v5610_v6 = vld [vmem:[#allocation6 + $0xd80] ss:$16 sps:$4 sm:$0xff]  }
 0x1d1   :  { %3474 = vmatpush1.bf16.msra.mxu0 %v5518_v7  ;;  %3802 = vmatpush1.bf16.msra.mxu1 %v5521_v8  ;;  %v5613_v7 = vld [vmem:[#allocation6 + $0xd88] ss:$16 sps:$4 sm:$0xff]   ;;  %v5618_v8 = vld [vmem:[#allocation6 + $0xda4] ss:$16 sps:$4 sm:$0xff]  }
 0x1d2   :  { %3475 = vmatprep.subr.bf16.mxu0 %v5526_v9  ;;  %3803 = vmatprep.subr.bf16.mxu1 %v5529_v10  ;;  %v5621_v9 = vld [vmem:[#allocation6 + $0xdac] ss:$16 sps:$4 sm:$0xff]   ;;  %v5616_v10 = vld [vmem:[#allocation6 + $0xda0] ss:$16 sps:$4 sm:$0xff]  }
 0x1d5   :  { %3476 = vmatpush1.bf16.msra.mxu0 %v5524_v12  ;;  %3804 = vmatpush1.bf16.msra.mxu1 %v5527_v13  ;;  %v5619_v12 = vld [vmem:[#allocation6 + $0xda8] ss:$16 sps:$4 sm:$0xff]   ;;  %v5624_v13 = vld [vmem:[#allocation6 + $0xdc4] ss:$16 sps:$4 sm:$0xff]  }
 0x1d6   :  { %3477 = vmatprep.subr.bf16.mxu0 %v5532_v15  ;;  %3805 = vmatprep.subr.bf16.mxu1 %v5535_v16  ;;  %v5627_v15 = vld [vmem:[#allocation6 + $0xdcc] ss:$16 sps:$4 sm:$0xff]   ;;  %v5622_v16 = vld [vmem:[#allocation6 + $0xdc0] ss:$16 sps:$4 sm:$0xff]  }
 0x1d9   :  { %3478 = vmatpush1.bf16.msra.mxu0 %v5530_v18  ;;  %3806 = vmatpush1.bf16.msra.mxu1 %v5533_v20  ;;  %v5625_v18 = vld [vmem:[#allocation6 + $0xdc8] ss:$16 sps:$4 sm:$0xff]   ;;  %v5630_v20 = vld [vmem:[#allocation6 + $0xde4] ss:$16 sps:$4 sm:$0xff]  }
 0x1da   :  { %3488 = vmatprep.subr.bf16.mxu0 %v5540_v11  ;;  %3816 = vmatprep.subr.bf16.mxu1 %v5543_v21  ;;  %v5633_v11 = vld [vmem:[#allocation6 + $0xdec] ss:$16 sps:$4 sm:$0xff]   ;;  %v5628_v21 = vld [vmem:[#allocation6 + $0xde0] ss:$16 sps:$4 sm:$0xff]  }
 0x1dc   :  { %3480 = vmatmul.mubr.bf16.vlgmr.msra.gmra.mrb[0].mxu0 %v4285_v22  ;;  %3808 = vmatmul.mubr.bf16.vlgmr.msra.gmra.mrb[0].mxu1 %v4285_v22  ;;  %v5631_v22 = vld [vmem:[#allocation6 + $0xde8] ss:$16 sps:$4 sm:$0xff]  }
 0x1dd   :  { %3489 = vmatpush1.bf16.msra.mxu0 %v5538_v23  ;;  %3817 = vmatpush1.bf16.msra.mxu1 %v5541_v24  ;;  %v5638_v23 = vld [vmem:[#allocation6 + $0xe04] ss:$16 sps:$4 sm:$0xff]   ;;  %v5641_v24 = vld [vmem:[#allocation6 + $0xe0c] ss:$16 sps:$4 sm:$0xff]  }
 0x1de   :  { %3490 = vmatprep.subr.bf16.mxu0 %v5546_v25  ;;  %3818 = vmatprep.subr.bf16.mxu1 %v5549_v17  ;;  %v4287_v25 = vcombine.low %v6036_v14, %v6036_v14  ;;  %v6042_v17 = vld [vmem:[#allocation3 + $0x38] sm:$0xff]  ;;  %v5650_v14 = vld [vmem:[#allocation6 + $0xe44] ss:$16 sps:$4 sm:$0xff]  }
 0x1df   :  { %3520 = vmatprep.mubr.bf16.mxu0 %v4288_v26  ;;  %3848 = vmatprep.mubr.bf16.mxu1 %v4288_v26  ;;  %v5636_v26 = vld [vmem:[#allocation6 + $0xe00] ss:$16 sps:$4 sm:$0xff]  }
 0x1e1   :  { %3491 = vmatpush1.bf16.msra.mxu0 %v5544_v27  ;;  %3819 = vmatpush1.bf16.msra.mxu1 %v5547_v28  ;;  %v5639_v27 = vld [vmem:[#allocation6 + $0xe08] ss:$16 sps:$4 sm:$0xff]   ;;  %v5644_v28 = vld [vmem:[#allocation6 + $0xe24] ss:$16 sps:$4 sm:$0xff]  }
 0x1e2   :  { %3492 = vmatprep.subr.bf16.mxu0 %v5552_v19  ;;  %3820 = vmatprep.subr.bf16.mxu1 %v5555_v29  ;;  %v5647_v19 = vld [vmem:[#allocation6 + $0xe2c] ss:$16 sps:$4 sm:$0xff]   ;;  %v4290_v29 = vcombine.high %v6042_v17, %v6042_v17 }
 0x1e5   :  { %3493 = vmatpush1.bf16.msra.mxu0 %v5550_v30  ;;  %3821 = vmatpush1.bf16.msra.mxu1 %v5553_v31  ;;  %v5642_v30 = vld [vmem:[#allocation6 + $0xe20] ss:$16 sps:$4 sm:$0xff]   ;;  %v5645_v31 = vld [vmem:[#allocation6 + $0xe28] ss:$16 sps:$4 sm:$0xff]  }
 0x1e6   :  { %3494 = vmatprep.subr.bf16.mxu0 %v5558_v32  ;;  %3822 = vmatprep.subr.bf16.mxu1 %v5561_v33  ;;  %v5653_v32 = vld [vmem:[#allocation6 + $0xe4c] ss:$16 sps:$4 sm:$0xff]   ;;  %v5648_v33 = vld [vmem:[#allocation6 + $0xe40] ss:$16 sps:$4 sm:$0xff]  }
 0x1e9   :  { %3495 = vmatpush1.bf16.msra.mxu0 %v5556_v34  ;;  %3823 = vmatpush1.bf16.msra.mxu1 %v5559_v35  ;;  %v5651_v34 = vld [vmem:[#allocation6 + $0xe48] ss:$16 sps:$4 sm:$0xff]   ;;  %v5656_v35 = vld [vmem:[#allocation6 + $0xe64] ss:$16 sps:$4 sm:$0xff]  }
 0x1ea   :  { %3496 = vmatprep.subr.bf16.mxu0 %v5564_v36  ;;  %3824 = vmatprep.subr.bf16.mxu1 %v5567_v37  ;;  %v5659_v36 = vld [vmem:[#allocation6 + $0xe6c] ss:$16 sps:$4 sm:$0xff]   ;;  %v5654_v37 = vld [vmem:[#allocation6 + $0xe60] ss:$16 sps:$4 sm:$0xff]  }
 0x1ed   :  { %3497 = vmatpush1.bf16.msra.mxu0 %v5562_v38  ;;  %3825 = vmatpush1.bf16.msra.mxu1 %v5565_v39  ;;  %v5657_v38 = vld [vmem:[#allocation6 + $0xe68] ss:$16 sps:$4 sm:$0xff]   ;;  %v5662_v39 = vld [vmem:[#allocation6 + $0xe84] ss:$16 sps:$4 sm:$0xff]  }
 0x1ee   :  { %3498 = vmatprep.subr.bf16.mxu0 %v5570_v40  ;;  %3826 = vmatprep.subr.bf16.mxu1 %v5573_v41  ;;  %v5665_v40 = vld [vmem:[#allocation6 + $0xe8c] ss:$16 sps:$4 sm:$0xff]   ;;  %v5660_v41 = vld [vmem:[#allocation6 + $0xe80] ss:$16 sps:$4 sm:$0xff]  }
 0x1f1   :  { %3499 = vmatpush1.bf16.msra.mxu0 %v5568_v42  ;;  %3827 = vmatpush1.bf16.msra.mxu1 %v5571_v43  ;;  %v5663_v42 = vld [vmem:[#allocation6 + $0xe88] ss:$16 sps:$4 sm:$0xff]   ;;  %v5668_v43 = vld [vmem:[#allocation6 + $0xea4] ss:$16 sps:$4 sm:$0xff]  }
 0x1f2   :  { %3500 = vmatprep.subr.bf16.mxu0 %v5576_v44  ;;  %3828 = vmatprep.subr.bf16.mxu1 %v5579_v45  ;;  %v5671_v44 = vld [vmem:[#allocation6 + $0xeac] ss:$16 sps:$4 sm:$0xff]   ;;  %v5666_v45 = vld [vmem:[#allocation6 + $0xea0] ss:$16 sps:$4 sm:$0xff]  }
 0x1f5   :  { %3501 = vmatpush1.bf16.msra.mxu0 %v5574_v46  ;;  %3829 = vmatpush1.bf16.msra.mxu1 %v5577_v47  ;;  %v5669_v46 = vld [vmem:[#allocation6 + $0xea8] ss:$16 sps:$4 sm:$0xff]   ;;  %v5674_v47 = vld [vmem:[#allocation6 + $0xec4] ss:$16 sps:$4 sm:$0xff]  }
 0x1f6   :  { %3502 = vmatprep.subr.bf16.mxu0 %v5582_v48  ;;  %3830 = vmatprep.subr.bf16.mxu1 %v5585_v49  ;;  %v5677_v48 = vld [vmem:[#allocation6 + $0xecc] ss:$16 sps:$4 sm:$0xff]   ;;  %v5672_v49 = vld [vmem:[#allocation6 + $0xec0] ss:$16 sps:$4 sm:$0xff]  }
 0x1f9   :  { %3503 = vmatpush1.bf16.msra.mxu0 %v5580_v50  ;;  %3831 = vmatpush1.bf16.msra.mxu1 %v5583_v51  ;;  %v5675_v50 = vld [vmem:[#allocation6 + $0xec8] ss:$16 sps:$4 sm:$0xff]   ;;  %v5680_v51 = vld [vmem:[#allocation6 + $0xee4] ss:$16 sps:$4 sm:$0xff]  }
 0x1fa   :  { %3504 = vmatprep.subr.bf16.mxu0 %v5588_v52  ;;  %3832 = vmatprep.subr.bf16.mxu1 %v5591_v53  ;;  %v5683_v52 = vld [vmem:[#allocation6 + $0xeec] ss:$16 sps:$4 sm:$0xff]   ;;  %v5678_v53 = vld [vmem:[#allocation6 + $0xee0] ss:$16 sps:$4 sm:$0xff]  }
 0x1fd   :  { %3505 = vmatpush1.bf16.msra.mxu0 %v5586_v54  ;;  %3833 = vmatpush1.bf16.msra.mxu1 %v5589_v55  ;;  %v5681_v54 = vld [vmem:[#allocation6 + $0xee8] ss:$16 sps:$4 sm:$0xff]   ;;  %v5686_v55 = vld [vmem:[#allocation6 + $0xf04] ss:$16 sps:$4 sm:$0xff]  }
 0x1fe   :  { %3506 = vmatprep.subr.bf16.mxu0 %v5594_v56  ;;  %3834 = vmatprep.subr.bf16.mxu1 %v5597_v57  ;;  %v5689_v56 = vld [vmem:[#allocation6 + $0xf0c] ss:$16 sps:$4 sm:$0xff]   ;;  %v5684_v57 = vld [vmem:[#allocation6 + $0xf00] ss:$16 sps:$4 sm:$0xff]  }
 0x201   :  { %3507 = vmatpush1.bf16.msra.mxu0 %v5592_v58  ;;  %3835 = vmatpush1.bf16.msra.mxu1 %v5595_v59  ;;  %v5687_v58 = vld [vmem:[#allocation6 + $0xf08] ss:$16 sps:$4 sm:$0xff]   ;;  %v5692_v59 = vld [vmem:[#allocation6 + $0xf24] ss:$16 sps:$4 sm:$0xff]  }
 0x202   :  { %3508 = vmatprep.subr.bf16.mxu0 %v5600_v60  ;;  %3836 = vmatprep.subr.bf16.mxu1 %v5603_v61  ;;  %v5695_v60 = vld [vmem:[#allocation6 + $0xf2c] ss:$16 sps:$4 sm:$0xff]   ;;  %v5690_v61 = vld [vmem:[#allocation6 + $0xf20] ss:$16 sps:$4 sm:$0xff]  }
 0x205   :  { %3509 = vmatpush1.bf16.msra.mxu0 %v5598_v62  ;;  %3837 = vmatpush1.bf16.msra.mxu1 %v5601_v63  ;;  %v5693_v62 = vld [vmem:[#allocation6 + $0xf28] ss:$16 sps:$4 sm:$0xff]   ;;  %v5698_v63 = vld [vmem:[#allocation6 + $0xf44] ss:$16 sps:$4 sm:$0xff]  }
 0x206   :  { %3510 = vmatprep.subr.bf16.mxu0 %v5606_v0  ;;  %3838 = vmatprep.subr.bf16.mxu1 %v5609_v1  ;;  %v5701_v0 = vld [vmem:[#allocation6 + $0xf4c] ss:$16 sps:$4 sm:$0xff]   ;;  %v5696_v1 = vld [vmem:[#allocation6 + $0xf40] ss:$16 sps:$4 sm:$0xff]  }
 0x209   :  { %3511 = vmatpush1.bf16.msra.mxu0 %v5604_v2  ;;  %3839 = vmatpush1.bf16.msra.mxu1 %v5607_v3  ;;  %v5699_v2 = vld [vmem:[#allocation6 + $0xf48] ss:$16 sps:$4 sm:$0xff]   ;;  %v5704_v3 = vld [vmem:[#allocation6 + $0xf64] ss:$16 sps:$4 sm:$0xff]  }
 0x20a   :  { %3512 = vmatprep.subr.bf16.mxu0 %v5612_v4  ;;  %3840 = vmatprep.subr.bf16.mxu1 %v5615_v5  ;;  %v5707_v4 = vld [vmem:[#allocation6 + $0xf6c] ss:$16 sps:$4 sm:$0xff]   ;;  %v5702_v5 = vld [vmem:[#allocation6 + $0xf60] ss:$16 sps:$4 sm:$0xff]  }
 0x20d   :  { %3513 = vmatpush1.bf16.msra.mxu0 %v5610_v6  ;;  %3841 = vmatpush1.bf16.msra.mxu1 %v5613_v7  ;;  %v5705_v6 = vld [vmem:[#allocation6 + $0xf68] ss:$16 sps:$4 sm:$0xff]   ;;  %v5710_v7 = vld [vmem:[#allocation6 + $0xf84] ss:$16 sps:$4 sm:$0xff]  }
 0x20e   :  { %3514 = vmatprep.subr.bf16.mxu0 %v5618_v8  ;;  %3842 = vmatprep.subr.bf16.mxu1 %v5621_v9  ;;  %v5713_v8 = vld [vmem:[#allocation6 + $0xf8c] ss:$16 sps:$4 sm:$0xff]   ;;  %v5708_v9 = vld [vmem:[#allocation6 + $0xf80] ss:$16 sps:$4 sm:$0xff]  }
 0x211   :  { %3515 = vmatpush1.bf16.msra.mxu0 %v5616_v10  ;;  %3843 = vmatpush1.bf16.msra.mxu1 %v5619_v12  ;;  %v5711_v10 = vld [vmem:[#allocation6 + $0xf88] ss:$16 sps:$4 sm:$0xff]   ;;  %v5716_v12 = vld [vmem:[#allocation6 + $0xfa4] ss:$16 sps:$4 sm:$0xff]  }
 0x212   :  { %3516 = vmatprep.subr.bf16.mxu0 %v5624_v13  ;;  %3844 = vmatprep.subr.bf16.mxu1 %v5627_v15  ;;  %v5719_v13 = vld [vmem:[#allocation6 + $0xfac] ss:$16 sps:$4 sm:$0xff]   ;;  %v5714_v15 = vld [vmem:[#allocation6 + $0xfa0] ss:$16 sps:$4 sm:$0xff]  }
 0x215   :  { %3517 = vmatpush1.bf16.msra.mxu0 %v5622_v16  ;;  %3845 = vmatpush1.bf16.msra.mxu1 %v5625_v18  ;;  %v5717_v16 = vld [vmem:[#allocation6 + $0xfa8] ss:$16 sps:$4 sm:$0xff]   ;;  %v5722_v18 = vld [vmem:[#allocation6 + $0xfc4] ss:$16 sps:$4 sm:$0xff]  }
 0x216   :  { %3518 = vmatprep.subr.bf16.mxu0 %v5630_v20  ;;  %3846 = vmatprep.subr.bf16.mxu1 %v5633_v11  ;;  %v5725_v20 = vld [vmem:[#allocation6 + $0xfcc] ss:$16 sps:$4 sm:$0xff]   ;;  %v5720_v11 = vld [vmem:[#allocation6 + $0xfc0] ss:$16 sps:$4 sm:$0xff]  }
 0x219   :  { %3519 = vmatpush1.bf16.msra.mxu0 %v5628_v21  ;;  %3847 = vmatpush1.bf16.msra.mxu1 %v5631_v22  ;;  %v5723_v21 = vld [vmem:[#allocation6 + $0xfc8] ss:$16 sps:$4 sm:$0xff]   ;;  %v5728_v22 = vld [vmem:[#allocation6 + $0xfe4] ss:$16 sps:$4 sm:$0xff]  }
 0x21a   :  { %3529 = vmatprep.subr.bf16.mxu0 %v5638_v23  ;;  %3857 = vmatprep.subr.bf16.mxu1 %v5641_v24  ;;  %v5731_v23 = vld [vmem:[#allocation6 + $0xfec] ss:$16 sps:$4 sm:$0xff]   ;;  %v5726_v24 = vld [vmem:[#allocation6 + $0xfe0] ss:$16 sps:$4 sm:$0xff]  }
 0x21c   :  { %3521 = vmatmul.mubr.bf16.vlgmr.msra.gmra.mrb[0].mxu0 %v4287_v25  ;;  %3849 = vmatmul.mubr.bf16.vlgmr.msra.gmra.mrb[0].mxu1 %v4287_v25  ;;  %v5729_v25 = vld [vmem:[#allocation6 + $0xfe8] ss:$16 sps:$4 sm:$0xff]  }
 0x21d   :  { %3530 = vmatpush1.bf16.msra.mxu0 %v5636_v26  ;;  %3858 = vmatpush1.bf16.msra.mxu1 %v5639_v27  ;;  %v5734_v26 = vld [vmem:[#allocation9 + $0x40] sm:$0xff]  }
 0x21e   :  { %3531 = vmatprep.subr.bf16.mxu0 %v5644_v28  ;;  %3859 = vmatprep.subr.bf16.mxu1 %v5647_v19  ;;  %v5735_v27 = vld [vmem:[#allocation9 + $0xc0] sm:$0xff]   ;;  %v4289_v28 = vcombine.low %v6042_v17, %v6042_v17  ;;  %v5744_v17 = vld [vmem:[#allocation9 + $0x10] sm:$0xff]  }
 0x21f   :  { %3561 = vmatprep.mubr.bf16.mxu0 %v4290_v29  ;;  %3889 = vmatprep.mubr.bf16.mxu1 %v4290_v29  ;;  %v5736_v19 = vld [vmem:[#allocation9] sm:$0xff]  }
 0x220   :  { %v5737_v29 = vld [vmem:[#allocation9 + $0x80] sm:$0xff]  }
 0x221   :  { %3532 = vmatpush1.bf16.msra.mxu0 %v5642_v30  ;;  %3860 = vmatpush1.bf16.msra.mxu1 %v5645_v31  ;;  %v5738_v30 = vld [vmem:[#allocation9 + $0x48] sm:$0xff]  }
 0x222   :  { %3533 = vmatprep.subr.bf16.mxu0 %v5650_v14  ;;  %3861 = vmatprep.subr.bf16.mxu1 %v5653_v32  ;;  %v5739_v31 = vld [vmem:[#allocation9 + $0xc8] sm:$0xff]  }
 0x223   :  { %v5740_v14 = vld [vmem:[#allocation9 + $0x8] sm:$0xff]  }
 0x224   :  { %v5741_v32 = vld [vmem:[#allocation9 + $0x88] sm:$0xff]  }
 0x225   :  { %3534 = vmatpush1.bf16.msra.mxu0 %v5648_v33  ;;  %3862 = vmatpush1.bf16.msra.mxu1 %v5651_v34  ;;  %v5742_v33 = vld [vmem:[#allocation9 + $0x50] sm:$0xff]  }
 0x226   :  { %3535 = vmatprep.subr.bf16.mxu0 %v5656_v35  ;;  %3863 = vmatprep.subr.bf16.mxu1 %v5659_v36  ;;  %v5743_v34 = vld [vmem:[#allocation9 + $0xd0] sm:$0xff]   ;;  %v5746_v36 = vld [vmem:[#allocation9 + $0x58] sm:$0xff]  }
 0x227   :  { %v5745_v35 = vld [vmem:[#allocation9 + $0x90] sm:$0xff]  }
 0x229   :  { %3536 = vmatpush1.bf16.msra.mxu0 %v5654_v37  ;;  %3864 = vmatpush1.bf16.msra.mxu1 %v5657_v38  ;;  %v5747_v37 = vld [vmem:[#allocation9 + $0xd8] sm:$0xff]  }
 0x22a   :  { %3537 = vmatprep.subr.bf16.mxu0 %v5662_v39  ;;  %3865 = vmatprep.subr.bf16.mxu1 %v5665_v40  ;;  %v5748_v38 = vld [vmem:[#allocation9 + $0x18] sm:$0xff]   ;;  %v5750_v40 = vld [vmem:[#allocation9 + $0x60] sm:$0xff]  }
 0x22b   :  { %v5749_v39 = vld [vmem:[#allocation9 + $0x98] sm:$0xff]  }
 0x22d   :  { %3538 = vmatpush1.bf16.msra.mxu0 %v5660_v41  ;;  %3866 = vmatpush1.bf16.msra.mxu1 %v5663_v42  ;;  %v5751_v41 = vld [vmem:[#allocation9 + $0xe0] sm:$0xff]  }
 0x22e   :  { %3539 = vmatprep.subr.bf16.mxu0 %v5668_v43  ;;  %3867 = vmatprep.subr.bf16.mxu1 %v5671_v44  ;;  %v5752_v42 = vld [vmem:[#allocation9 + $0x20] sm:$0xff]   ;;  %v5754_v44 = vld [vmem:[#allocation9 + $0x68] sm:$0xff]  }
 0x22f   :  { %v5753_v43 = vld [vmem:[#allocation9 + $0xa0] sm:$0xff]  }
 0x231   :  { %3540 = vmatpush1.bf16.msra.mxu0 %v5666_v45  ;;  %3868 = vmatpush1.bf16.msra.mxu1 %v5669_v46  ;;  %v5755_v45 = vld [vmem:[#allocation9 + $0xe8] sm:$0xff]  }
 0x232   :  { %3541 = vmatprep.subr.bf16.mxu0 %v5674_v47  ;;  %3869 = vmatprep.subr.bf16.mxu1 %v5677_v48  ;;  %v5756_v46 = vld [vmem:[#allocation9 + $0x28] sm:$0xff]   ;;  %v5758_v48 = vld [vmem:[#allocation9 + $0x70] sm:$0xff]  }
 0x233   :  { %v5757_v47 = vld [vmem:[#allocation9 + $0xa8] sm:$0xff]  }
 0x235   :  { %3542 = vmatpush1.bf16.msra.mxu0 %v5672_v49  ;;  %3870 = vmatpush1.bf16.msra.mxu1 %v5675_v50  ;;  %v5759_v49 = vld [vmem:[#allocation9 + $0xf0] sm:$0xff]  }
 0x236   :  { %3543 = vmatprep.subr.bf16.mxu0 %v5680_v51  ;;  %3871 = vmatprep.subr.bf16.mxu1 %v5683_v52  ;;  %v5760_v50 = vld [vmem:[#allocation9 + $0x30] sm:$0xff]   ;;  %v5762_v52 = vld [vmem:[#allocation9 + $0x78] sm:$0xff]  }
 0x237   :  { %v5761_v51 = vld [vmem:[#allocation9 + $0xb0] sm:$0xff]  }
 0x239   :  { %3544 = vmatpush1.bf16.msra.mxu0 %v5678_v53  ;;  %3872 = vmatpush1.bf16.msra.mxu1 %v5681_v54  ;;  %v5763_v53 = vld [vmem:[#allocation9 + $0xf8] sm:$0xff]  }
 0x23a   :  { %3545 = vmatprep.subr.bf16.mxu0 %v5686_v55  ;;  %3873 = vmatprep.subr.bf16.mxu1 %v5689_v56  ;;  %v5764_v54 = vld [vmem:[#allocation9 + $0x38] sm:$0xff]   ;;  %v606_v56 = vlaneseq }
 0x23b   :  { %v5765_v55 = vld [vmem:[#allocation9 + $0xb8] sm:$0xff]  }
 0x23d   :  { %3546 = vmatpush1.bf16.msra.mxu0 %v5684_v57  ;;  %3874 = vmatpush1.bf16.msra.mxu1 %v5687_v58  ;;  %v607_v57 = vshrl.u32 %v606_v56, 7 }
 0x23e   :  { %3547 = vmatprep.subr.bf16.mxu0 %v5692_v59  ;;  %3875 = vmatprep.subr.bf16.mxu1 %v5695_v60  ;;  %v604_v60 = vld [vmem:[#allocation8] sm:$0xf] }
 0x23f   :  { %v608_v58 = vsub.s32 0, %v607_v57  ;;  %v616_v59 = vsub.s32 2, %v607_v57 }
 0x241   :  { %3548 = vmatpush1.bf16.msra.mxu0 %v5690_v61  ;;  %3876 = vmatpush1.bf16.msra.mxu1 %v5693_v62  ;;  %v612_v61 = vsub.s32 1, %v607_v57  ;;  %v620_v62 = vsub.s32 3, %v607_v57 }
 0x242   :  { %3549 = vmatprep.subr.bf16.mxu0 %v5698_v63  ;;  %3877 = vmatprep.subr.bf16.mxu1 %v5701_v0  ;;  %v609_v63 = vrot.slane %v604_v60, %v608_v58  ;;  %v617_v0 = vrot.slane %v604_v60, %v616_v59 }
 0x245   :  { %3550 = vmatpush1.bf16.msra.mxu0 %v5696_v1  ;;  %3878 = vmatpush1.bf16.msra.mxu1 %v5699_v2  ;;  %v613_v1 = vrot.slane %v604_v60, %v612_v61  ;;  %v621_v2 = vrot.slane %v604_v60, %v620_v62 }
 0x246   :  { %3551 = vmatprep.subr.bf16.mxu0 %v5704_v3  ;;  %3879 = vmatprep.subr.bf16.mxu1 %v5707_v4 }
 0x249   :  { %3552 = vmatpush1.bf16.msra.mxu0 %v5702_v5  ;;  %3880 = vmatpush1.bf16.msra.mxu1 %v5705_v6 }
 0x24a   :  { %3553 = vmatprep.subr.bf16.mxu0 %v5710_v7  ;;  %3881 = vmatprep.subr.bf16.mxu1 %v5713_v8 }
 0x24d   :  { %3554 = vmatpush1.bf16.msra.mxu0 %v5708_v9  ;;  %3882 = vmatpush1.bf16.msra.mxu1 %v5711_v10 }
 0x24e   :  { %3555 = vmatprep.subr.bf16.mxu0 %v5716_v12  ;;  %3883 = vmatprep.subr.bf16.mxu1 %v5719_v13 }
 0x251   :  { %3556 = vmatpush1.bf16.msra.mxu0 %v5714_v15  ;;  %3884 = vmatpush1.bf16.msra.mxu1 %v5717_v16 }
 0x252   :  { %3557 = vmatprep.subr.bf16.mxu0 %v5722_v18  ;;  %3885 = vmatprep.subr.bf16.mxu1 %v5725_v20 }
 0x255   :  { %3558 = vmatpush1.bf16.msra.mxu0 %v5720_v11  ;;  %3886 = vmatpush1.bf16.msra.mxu1 %v5723_v21 }
 0x256   :  { %3559 = vmatprep.subr.bf16.mxu0 %v5728_v22  ;;  %3887 = vmatprep.subr.bf16.mxu1 %v5731_v23 }
 0x259   :  { %3560 = vmatpush1.bf16.msra.mxu0 %v5726_v24  ;;  %3888 = vmatpush1.bf16.msra.mxu1 %v5729_v25 }
 0x25a   :  { %4836 = vmatprep.subr.bf16.mxu0 %v5734_v26  ;;  %4858 = vmatprep.subr.bf16.mxu1 %v5735_v27 }
 0x25c   :  { %3562 = vmatmul.mubr.bf16.vlgmr.msra.gmra.mrb[0].mxu0 %v4289_v28  ;;  %3890 = vmatmul.mubr.bf16.vlgmr.msra.gmra.mrb[0].mxu1 %v4289_v28  ;;  %v4803_v28 = vld [vmem:[#allocation11] ss:$0 sm:$0xff] }
 0x25d   :  { %4837 = vmatpush3.bf16.msra.mxu0 %v5736_v19  ;;  %4859 = vmatpush3.bf16.msra.mxu1 %v5737_v29 }
 0x25e   :  { %4838 = vmatprep.subr.bf16.mxu0 %v5738_v30  ;;  %4860 = vmatprep.subr.bf16.mxu1 %v5739_v31 }
 0x261   :  { %4839 = vmatpush3.bf16.msra.mxu0 %v5740_v14  ;;  %4861 = vmatpush3.bf16.msra.mxu1 %v5741_v32 }
 0x262   :  { %4840 = vmatprep.subr.bf16.mxu0 %v5742_v33  ;;  %4862 = vmatprep.subr.bf16.mxu1 %v5743_v34 }
 0x265   :  { %4841 = vmatpush3.bf16.msra.mxu0 %v5744_v17  ;;  %4863 = vmatpush3.bf16.msra.mxu1 %v5745_v35 }
 0x266   :  { %4842 = vmatprep.subr.bf16.mxu0 %v5746_v36  ;;  %4864 = vmatprep.subr.bf16.mxu1 %v5747_v37 }
 0x269   :  { %4843 = vmatpush3.bf16.msra.mxu0 %v5748_v38  ;;  %4865 = vmatpush3.bf16.msra.mxu1 %v5749_v39 }
 0x26a   :  { %4844 = vmatprep.subr.bf16.mxu0 %v5750_v40  ;;  %4866 = vmatprep.subr.bf16.mxu1 %v5751_v41 }
 0x26d   :  { %4845 = vmatpush3.bf16.msra.mxu0 %v5752_v42  ;;  %4867 = vmatpush3.bf16.msra.mxu1 %v5753_v43 }
 0x26e   :  { %4846 = vmatprep.subr.bf16.mxu0 %v5754_v44  ;;  %4868 = vmatprep.subr.bf16.mxu1 %v5755_v45 }
 0x271   :  { %4847 = vmatpush3.bf16.msra.mxu0 %v5756_v46  ;;  %4869 = vmatpush3.bf16.msra.mxu1 %v5757_v47 }
 0x272   :  { %4848 = vmatprep.subr.bf16.mxu0 %v5758_v48  ;;  %4870 = vmatprep.subr.bf16.mxu1 %v5759_v49 }
 0x275   :  { %4849 = vmatpush3.bf16.msra.mxu0 %v5760_v50  ;;  %4871 = vmatpush3.bf16.msra.mxu1 %v5761_v51 }
 0x276   :  { %4850 = vmatprep.subr.bf16.mxu0 %v5762_v52  ;;  %4872 = vmatprep.subr.bf16.mxu1 %v5763_v53 }
 0x279   :  { %4851 = vmatpush3.bf16.msra.mxu0 %v5764_v54  ;;  %4873 = vmatpush3.bf16.msra.mxu1 %v5765_v55 }
 0x32f   :  { %v3563_v3 = vpop.f32.mrb[0].mxu0  ;;  %v3891_v4 = vpop.f32.mrb[0].mxu1 }
 0x330   :  { %v4880_v5 = vadd.f32 %v3563_v3, %v609_v63  ;;  %v4882_v6 = vadd.f32 %v3891_v4, %v617_v0  ;;  %v3565_v7 = vpop.f32.mrb[1].mxu0  ;;  %v3893_v8 = vpop.f32.mrb[1].mxu1 }
 0x331   :  { %v4881_v9 = vadd.f32 %v3565_v7, %v613_v1  ;;  %v4883_v10 = vadd.f32 %v3893_v8, %v621_v2  ;;  %v3567_v12 = vpop.f32.mrb[2].mxu0  ;;  %v3895_v13 = vpop.f32.mrb[2].mxu1 }
 0x332   :  { %v3898_v15 = vmax.f32 %v4880_v5, 0.0  ;;  %v3900_v16 = vmax.f32 %v4882_v6, 0.0  ;;  %v3568_v18 = vpop.f32.mrb[3].mxu0  ;;  %v3896_v20 = vpop.f32.mrb[3].mxu1 }
 0x333   :  { %v3899_v11 = vmax.f32 %v4881_v9, 0.0  ;;  %v3901_v21 = vmax.f32 %v4883_v10, 0.0 }
 0x334   :  { %v3910_v24 = vpack.c.bf16 %v3898_v15, %v3898_v15  ;;  %v3912_v25 = vpack.c.bf16 %v3900_v16, %v3900_v16 }
 0x335   :  { %v3911_v22 = vpack.c.bf16 %v3899_v11, %v3899_v11  ;;  %v3913_v23 = vpack.c.bf16 %v3901_v21, %v3901_v21 }
 0x337   :  { %4209 = vmatprep.mubr.bf16.mxu0 %v3911_v22  ;;  %4249 = vmatprep.mubr.bf16.mxu1 %v3913_v23 }
 0x338   :  { %4210 = vmatmul.mubr.bf16.vlgmr.msra.gmra.mrb[4].mxu0 %v3910_v24  ;;  %4250 = vmatmul.mubr.bf16.vlgmr.msra.gmra.mrb[4].mxu1 %v3912_v25 }
 0x40b   :  { %v4852_v26 = vpop.f32.mrb[4].mxu0  ;;  %v4874_v27 = vpop.f32.mrb[4].mxu1 }
 0x40c   :  { %v4853_v19 = vpop.f32.mrb[5].mxu0  ;;  %v4875_v29 = vpop.f32.mrb[5].mxu1 }
 0x40d   :  { %v4854_v30 = vadd.f32 %v4853_v19, %v4852_v26  ;;  %v4876_v31 = vadd.f32 %v4875_v29, %v4874_v27  ;;  %v4855_v14 = vpop.f32.mrb[6].mxu0  ;;  %v4877_v32 = vpop.f32.mrb[6].mxu1 }
 0x40e   :  { %v4856_v33 = vpop.f32.mrb[7].mxu0  ;;  %v4878_v34 = vpop.f32.mrb[7].mxu1 }
 0x40f   :  { %v4212_v17 = vadd.f32 %v4854_v30, %v4803_v28 }
 0x411   :  { %v4252_v35 = vadd.f32 %v4876_v31, %v4212_v17 }
 0x413   :  { %4257 = vst [vmem:[#allocation12] sm:$0xff] %v4252_v35 }
 0x414   :  { %5887 = shalt.err (!%p5884_p2)
}
 0x415   :  { %s5888_s6 = scalar_lea.hbm %s6065_s5, 128 }
 0x416   :  { %p5889_p3 = scmp.ne.s32.totalorder %s6065_s5, %s5888_s6  ;;  %p5892_p4 = scmp.lt.u32.totalorder %s5888_s6, %s6065_s5 }
 0x418   :  { %p5894_p5 = pnand %p5892_p4, %p5889_p3 }
 0x41a   :  { %5897 = shalt.err (!%p5894_p5)
}
 0x41b   :  { %4267 = dma.vmem_to_hbm [thread:$0]  %s4265_s28, 128, %s6065_s5, [#allocation5]  }
 0x41c   :  { %5904 = dma.done.wait [#allocation5], 128  }
 0x41d   :  { %5905 = vsyncadd [#allocation5], 4294967168 }
 0x41e   :  { %4271 = vsyncpa [#allocation4], 1 }
 0x41f   :  { %4272 = vsyncpa [#allocation7], 1 }
 0x420   :  { %4273 = vsyncpa [#allocation10], 1 }
 0x421   :  { %4274 = vsyncpa [#allocation5], 1 }

</bundles_post_ra>
